<compile_context>
chip_gen: v5e
topology: v5e:2x2
jax: 0.10.0
libtpu: 0.0.40
codegen_flags: <defaults>
</compile_context>

<pallas_src>
import jax
import jax.numpy as jnp
from jax.experimental import pallas as pl
from jax.experimental.pallas import tpu as pltpu


# ----------------------------------------------------------------- kernel ----

def _conv_bn_relu(h, slab_ref, w_ref, b_ref, g_ref, be_ref):
    """Conv1d(K, padding='same') + BatchNorm1d (batch stats) + ReLU, channels-last.

    h:        (B, T, Cin)            f32 value
    slab_ref: (B, T + K - 1, K*Cin)  VMEM im2col slab scratch
    w_ref:    (K*Cin, Cout)          tap-major im2col weight (row k*Cin + c)
    b/g/be:   (1, 1, Cout)
    returns   (B, T, Cout)
    """
    B, T, Cin = h.shape
    KC, Cout = w_ref.shape
    K = KC // Cin
    half = K // 2

    # Scatter the (unsliced) activation into the im2col slab: lane block k is
    # written at row offset (K-1-k); only the <=(K-1)-row halo of each block is
    # zero-filled.  Rows [half, half+T) then hold exactly the K shifted windows.
    for k in range(K):
        c0 = k * Cin
        o = (K - 1) - k
        if o > 0:
            slab_ref[:, :o, c0:c0 + Cin] = jnp.zeros((B, o, Cin), jnp.float32)
        if k > 0:
            slab_ref[:, o + T:, c0:c0 + Cin] = jnp.zeros((B, k, Cin), jnp.float32)
        slab_ref[:, o:o + T, c0:c0 + Cin] = h

    # ONE non-batched MXU matmul over all (B, T) rows, contraction depth K*Cin.
    cols = slab_ref[:, half:half + T, :]                    # (B, T, K*Cin)
    y = jnp.dot(cols.reshape(B * T, KC), w_ref[...],
                preferred_element_type=jnp.float32).reshape(B, T, Cout)
    y = y + b_ref[...]

    # BatchNorm1d (training mode): biased stats over (batch, length) per channel.
    mean = jnp.mean(y, axis=(0, 1), keepdims=True)
    var = jnp.mean(jnp.square(y - mean), axis=(0, 1), keepdims=True)
    y = (y - mean) * jax.lax.rsqrt(var + 1e-5)
    return jnp.maximum(y * g_ref[...] + be_ref[...], 0.0)


def _double_conv(h, slab1_ref, slab2_ref,
                 w1_ref, b1_ref, g1_ref, be1_ref,
                 w2_ref, b2_ref, g2_ref, be2_ref, o_ref):
    h = _conv_bn_relu(h, slab1_ref, w1_ref, b1_ref, g1_ref, be1_ref)
    h = _conv_bn_relu(h, slab2_ref, w2_ref, b2_ref, g2_ref, be2_ref)
    o_ref[...] = h                                           # single output store


# ------------------------------------------------------------ wrapper glue ----

def _full_spec(shape):
    n = len(shape)
    return pl.BlockSpec(tuple(shape), lambda i, _n=n: (0,) * _n)


def down_forward(params, x_ncl, selection, rand_idx=None):
    """Down.forward(x, selection).  x_ncl: (B, N, L) NCL -> (B, Cout, L//4)."""
    B, N, L = x_ncl.shape
    L4 = L // 4
    K, _, Cout = params['w1'].shape
    PK = params['press_w'].shape[2]                          # 17
    ph = PK // 2                                             # 8

    x_cl = jnp.transpose(x_ncl, (0, 2, 1))                   # (B, L, N) channels-last

    # tap-major im2col conv weights: (K, Cin, Cout) -> (K*Cin, Cout)
    w1 = params['w1'].reshape(K * N, Cout)
    w2 = params['w2'].reshape(K * Cout, Cout)
    conv_args = (w1, params['b1'], params['g1'], params['be1'],
                 w2, params['b2'], params['g2'], params['be2'])

    slabs = [pltpu.VMEM((B, L4 + K - 1, K * N), jnp.float32),
             pltpu.VMEM((B, L4 + K - 1, K * Cout), jnp.float32)]

    if selection == 'r':
        # TODO(synk): PyTorch draws torch.randint on CUDA inside forward(); the
        # random group indices are supplied here as an explicit int32 input.
        idx_cl = jnp.transpose(rand_idx.astype(jnp.int32), (0, 2, 1))   # (B, L4, N)
        xg = x_cl.reshape(B, L4, 4 * N)                      # lane-folded groups of 4

        def kernel(xg_ref, idx_ref,
                   w1_ref, b1_ref, g1_ref, be1_ref,
                   w2_ref, b2_ref, g2_ref, be2_ref,
                   o_ref, slab1, slab2):
            xg_v = xg_ref[...]
            idx = idx_ref[...]
            x0 = xg_v[:, :, 0 * N:1 * N]
            x1 = xg_v[:, :, 1 * N:2 * N]
            x2 = xg_v[:, :, 2 * N:3 * N]
            x3 = xg_v[:, :, 3 * N:4 * N]
            h = jnp.where(idx == 0, x0,
                jnp.where(idx == 1, x1,
                jnp.where(idx == 2, x2, x3)))
            _double_conv(h, slab1, slab2, w1_ref, b1_ref, g1_ref, be1_ref,
                         w2_ref, b2_ref, g2_ref, be2_ref, o_ref)

        ins = (xg, idx_cl) + conv_args
        scratch = slabs

    elif selection == 's':
        # segment_sample: Conv1d(4 -> 1, k=17, pad=8) over the 4 length-L4
        # segments, as 17 shifted lane-broadcast FMAs (no band matrix).
        z = x_cl.reshape(B, 4, L4, N).transpose(0, 2, 1, 3).reshape(B, L4, 4 * N)
        # wlane[k, 0, 0, s*N + n] = press_w[0, s, k]
        wlane = jnp.repeat(jnp.transpose(params['press_w'][0], (1, 0)),
                           N, axis=1).reshape(PK, 1, 1, 4 * N)
        pbias = params['press_b'].reshape(1, 1, 1)

        def kernel(z_ref, wlane_ref, pbias_ref,
                   w1_ref, b1_ref, g1_ref, be1_ref,
                   w2_ref, b2_ref, g2_ref, be2_ref,
                   o_ref, zpad, slab1, slab2):
            # zero only the halo rows of the padded segment buffer
            zpad[:, :ph, :] = jnp.zeros((B, ph, 4 * N), jnp.float32)
            zpad[:, ph + L4:, :] = jnp.zeros((B, ph, 4 * N), jnp.float32)
            zpad[:, ph:ph + L4, :] = z_ref[...]
            acc = jnp.zeros((B, L4, 4 * N), jnp.float32)
            for k in range(PK):                               # 17 shifted FMAs (VPU)
                acc = acc + zpad[:, k:k + L4, :] * wlane_ref[k]
            h = (acc[:, :, 0 * N:1 * N] + acc[:, :, 1 * N:2 * N]
                 + acc[:, :, 2 * N:3 * N] + acc[:, :, 3 * N:4 * N]) + pbias_ref[...]
            _double_conv(h, slab1, slab2, w1_ref, b1_ref, g1_ref, be1_ref,
                         w2_ref, b2_ref, g2_ref, be2_ref, o_ref)

        ins = (z, wlane, pbias) + conv_args
        scratch = [pltpu.VMEM((B, L4 + PK - 1, 4 * N), jnp.float32)] + slabs

    else:
        # AvgPool1d(4, 4): 3 VPU adds + scale on the lane-folded view.
        xg = x_cl.reshape(B, L4, 4 * N)

        def kernel(xg_ref,
                   w1_ref, b1_ref, g1_ref, be1_ref,
                   w2_ref, b2_ref, g2_ref, be2_ref,
                   o_ref, slab1, slab2):
            xg_v = xg_ref[...]
            h = 0.25 * (xg_v[:, :, 0 * N:1 * N] + xg_v[:, :, 1 * N:2 * N]
                        + xg_v[:, :, 2 * N:3 * N] + xg_v[:, :, 3 * N:4 * N])
            _double_conv(h, slab1, slab2, w1_ref, b1_ref, g1_ref, be1_ref,
                         w2_ref, b2_ref, g2_ref, be2_ref, o_ref)

        ins = (xg,) + conv_args
        scratch = slabs

    # TODO(synk): grid=(1,) keeps this (small) problem fully VMEM-resident; for
    # production shapes tile (B, L4) on a real grid (parallel semantics for v7x
    # megacore) and turn the BatchNorm into a two-pass cross-tile reduction,
    # since its batch stats couple all of B x T.
    out_cl = pl.pallas_call(
        kernel,
        out_shape=jax.ShapeDtypeStruct((B, L4, Cout), jnp.float32),
        grid=(1,),
        in_specs=[_full_spec(a.shape) for a in ins],
        out_specs=_full_spec((B, L4, Cout)),
        scratch_shapes=scratch,
        compiler_params=pltpu.CompilerParams(
            dimension_semantics=("arbitrary",),
            vmem_limit_bytes=32 * 1024 * 1024),
    )(*ins)
    return jnp.transpose(out_cl, (0, 2, 1))                  # back to NCL


# --------------------------------------------------------------- parameters ---

def init_down_params(key, in_channels, out_channels, k=7, press_k=17):
    """Deterministic params. Conv weights stored as (K, Cin, Cout)
    (torch layout (Cout, Cin, K) transposed); BN gamma/beta = ones/zeros."""
    ks = jax.random.split(key, 4)

    def conv_init(kk, kw, cin, cout):
        k1, k2 = jax.random.split(kk)
        s = (cin * kw) ** -0.5
        w = jax.random.uniform(k1, (kw, cin, cout), jnp.float32, -s, s)
        b = jax.random.uniform(k2, (1, 1, cout), jnp.float32, -s, s)
        return w, b

    w1, b1 = conv_init(ks[0], k, in_channels, out_channels)
    w2, b2 = conv_init(ks[1], k, out_channels, out_channels)
    s = (4 * press_k) ** -0.5
    press_w = jax.random.uniform(ks[2], (1, 4, press_k), jnp.float32, -s, s)
    press_b = jax.random.uniform(ks[3], (1,), jnp.float32, -s, s)
    ones = jnp.ones((1, 1, out_channels), jnp.float32)
    zeros = jnp.zeros((1, 1, out_channels), jnp.float32)
    return dict(w1=w1, b1=b1, g1=ones, be1=zeros,
                w2=w2, b2=b2, g2=ones, be2=zeros,
                press_w=press_w, press_b=press_b)


# --------------------------------------------------------------------- main ---

if __name__ == "__main__":
    B, IN_CH, OUT_CH, L = 2, 4, 8, 64                        # L % 4 == 0, L//4 = 16
    key = jax.random.PRNGKey(0)
    kx, kp, kr = jax.random.split(key, 3)
    x = jax.random.normal(kx, (B, IN_CH, L), jnp.float32)    # NCL
    params = init_down_params(kp, IN_CH, OUT_CH)
    rand_idx = jax.random.randint(kr, (B, IN_CH, L // 4), 0, 4, dtype=jnp.int32)

    fwd = jax.jit(down_forward, static_argnames=("selection",))
    for sel in ("r", "s", "m"):
        out = jax.block_until_ready(
            fwd(params, x, selection=sel,
                rand_idx=(rand_idx if sel == "r" else None)))
        assert out.shape == (B, OUT_CH, L // 4), (sel, out.shape)
        assert bool(jnp.all(jnp.isfinite(out))), sel
    print("KERNEL_OK")
</pallas_src>

<mosaic_0001>
module attributes {stable_mosaic.version = 11 : i64} {
  func.func @kernel(%arg0: i32, %arg1: memref<2x16x16xf32, #tpu.memory_space<vmem>>, %arg2: memref<2x16x4xi32, #tpu.memory_space<vmem>>, %arg3: memref<28x8xf32, #tpu.memory_space<vmem>>, %arg4: memref<1x1x8xf32, #tpu.memory_space<vmem>>, %arg5: memref<1x1x8xf32, #tpu.memory_space<vmem>>, %arg6: memref<1x1x8xf32, #tpu.memory_space<vmem>>, %arg7: memref<56x8xf32, #tpu.memory_space<vmem>>, %arg8: memref<1x1x8xf32, #tpu.memory_space<vmem>>, %arg9: memref<1x1x8xf32, #tpu.memory_space<vmem>>, %arg10: memref<1x1x8xf32, #tpu.memory_space<vmem>>, %arg11: memref<2x16x8xf32, #tpu.memory_space<vmem>>, %arg12: memref<2x22x28xf32, #tpu.memory_space<vmem>>, %arg13: memref<2x22x56xf32, #tpu.memory_space<vmem>>) attributes {dimension_semantics = [#tpu.dimension_semantics<arbitrary>], iteration_bounds = array<i64: 1>, scalar_prefetch = 0 : i64, scratch_operands = 2 : i64, tpu.core_type = #tpu.core_type<tc>, window_params = [{pipeline_mode = #tpu.pipeline_mode<synchronous>, transform_indices = @transform_0, window_bounds = array<i64: 2, 16, 16>}, {pipeline_mode = #tpu.pipeline_mode<synchronous>, transform_indices = @transform_1, window_bounds = array<i64: 2, 16, 4>}, {pipeline_mode = #tpu.pipeline_mode<synchronous>, transform_indices = @transform_2, window_bounds = array<i64: 28, 8>}, {pipeline_mode = #tpu.pipeline_mode<synchronous>, transform_indices = @transform_3, window_bounds = array<i64: 1, 1, 8>}, {pipeline_mode = #tpu.pipeline_mode<synchronous>, transform_indices = @transform_4, window_bounds = array<i64: 1, 1, 8>}, {pipeline_mode = #tpu.pipeline_mode<synchronous>, transform_indices = @transform_5, window_bounds = array<i64: 1, 1, 8>}, {pipeline_mode = #tpu.pipeline_mode<synchronous>, transform_indices = @transform_6, window_bounds = array<i64: 56, 8>}, {pipeline_mode = #tpu.pipeline_mode<synchronous>, transform_indices = @transform_7, window_bounds = array<i64: 1, 1, 8>}, {pipeline_mode = #tpu.pipeline_mode<synchronous>, transform_indices = @transform_8, window_bounds = array<i64: 1, 1, 8>}, {pipeline_mode = #tpu.pipeline_mode<synchronous>, transform_indices = @transform_9, window_bounds = array<i64: 1, 1, 8>}, {pipeline_mode = #tpu.pipeline_mode<synchronous>, transform_indices = @transform_10, window_bounds = array<i64: 2, 16, 8>}]} {
    %c0 = arith.constant 0 : index
    %c0_0 = arith.constant 0 : index
    %c0_1 = arith.constant 0 : index
    %0 = vector.load %arg1[%c0, %c0_0, %c0_1] : memref<2x16x16xf32, #tpu.memory_space<vmem>>, vector<2x16x16xf32>
    %c0_2 = arith.constant 0 : index
    %c0_3 = arith.constant 0 : index
    %c0_4 = arith.constant 0 : index
    %1 = vector.load %arg2[%c0_2, %c0_3, %c0_4] : memref<2x16x4xi32, #tpu.memory_space<vmem>>, vector<2x16x4xi32>
    %2 = vector.extract_strided_slice %0 {offsets = [0, 0, 0], sizes = [2, 16, 4], strides = [1, 1, 1]} : vector<2x16x16xf32> to vector<2x16x4xf32>
    %3 = vector.extract_strided_slice %0 {offsets = [0, 0, 4], sizes = [2, 16, 4], strides = [1, 1, 1]} : vector<2x16x16xf32> to vector<2x16x4xf32>
    %4 = vector.extract_strided_slice %0 {offsets = [0, 0, 8], sizes = [2, 16, 4], strides = [1, 1, 1]} : vector<2x16x16xf32> to vector<2x16x4xf32>
    %5 = vector.extract_strided_slice %0 {offsets = [0, 0, 12], sizes = [2, 16, 4], strides = [1, 1, 1]} : vector<2x16x16xf32> to vector<2x16x4xf32>
    %c0_i32 = arith.constant 0 : i32
    %6 = vector.broadcast %c0_i32 : i32 to vector<2x16x4xi32>
    %7 = arith.cmpi eq, %1, %6 : vector<2x16x4xi32>
    %c1_i32 = arith.constant 1 : i32
    %8 = vector.broadcast %c1_i32 : i32 to vector<2x16x4xi32>
    %9 = arith.cmpi eq, %1, %8 : vector<2x16x4xi32>
    %c2_i32 = arith.constant 2 : i32
    %10 = vector.broadcast %c2_i32 : i32 to vector<2x16x4xi32>
    %11 = arith.cmpi eq, %1, %10 : vector<2x16x4xi32>
    %12 = arith.select %11, %4, %5 : vector<2x16x4xi1>, vector<2x16x4xf32>
    %13 = arith.select %9, %3, %12 : vector<2x16x4xi1>, vector<2x16x4xf32>
    %14 = arith.select %7, %2, %13 : vector<2x16x4xi1>, vector<2x16x4xf32>
    %cst = arith.constant 0.000000e+00 : f32
    %15 = vector.broadcast %cst : f32 to vector<2x6x4xf32>
    %c0_5 = arith.constant 0 : index
    %c0_6 = arith.constant 0 : index
    %c0_7 = arith.constant 0 : index
    %16 = vector.load %arg12[%c0_5, %c0_6, %c0_7] : memref<2x22x28xf32, #tpu.memory_space<vmem>>, vector<2x6x4xf32>
    tpu.vector_store %arg12[%c0_5, %c0_6, %c0_7], %15 {strides = array<i32>} : memref<2x22x28xf32, #tpu.memory_space<vmem>>, vector<2x6x4xf32>,
    %c0_8 = arith.constant 0 : index
    %c6 = arith.constant 6 : index
    %c0_9 = arith.constant 0 : index
    %17 = vector.load %arg12[%c0_8, %c6, %c0_9] : memref<2x22x28xf32, #tpu.memory_space<vmem>>, vector<2x16x4xf32>
    tpu.vector_store %arg12[%c0_8, %c6, %c0_9], %14 {strides = array<i32>} : memref<2x22x28xf32, #tpu.memory_space<vmem>>, vector<2x16x4xf32>,
    %cst_10 = arith.constant 0.000000e+00 : f32
    %18 = vector.broadcast %cst_10 : f32 to vector<2x5x4xf32>
    %c0_11 = arith.constant 0 : index
    %c0_12 = arith.constant 0 : index
    %c4 = arith.constant 4 : index
    %19 = vector.load %arg12[%c0_11, %c0_12, %c4] : memref<2x22x28xf32, #tpu.memory_space<vmem>>, vector<2x5x4xf32>
    tpu.vector_store %arg12[%c0_11, %c0_12, %c4], %18 {strides = array<i32>} : memref<2x22x28xf32, #tpu.memory_space<vmem>>, vector<2x5x4xf32>,
    %cst_13 = arith.constant 0.000000e+00 : f32
    %20 = vector.broadcast %cst_13 : f32 to vector<2x1x4xf32>
    %c0_14 = arith.constant 0 : index
    %c21 = arith.constant 21 : index
    %c4_15 = arith.constant 4 : index
    %21 = vector.load %arg12[%c0_14, %c21, %c4_15] : memref<2x22x28xf32, #tpu.memory_space<vmem>>, vector<2x1x4xf32>
    tpu.vector_store %arg12[%c0_14, %c21, %c4_15], %20 {strides = array<i32>} : memref<2x22x28xf32, #tpu.memory_space<vmem>>, vector<2x1x4xf32>,
    %c0_16 = arith.constant 0 : index
    %c5 = arith.constant 5 : index
    %c4_17 = arith.constant 4 : index
    %22 = vector.load %arg12[%c0_16, %c5, %c4_17] : memref<2x22x28xf32, #tpu.memory_space<vmem>>, vector<2x16x4xf32>
    tpu.vector_store %arg12[%c0_16, %c5, %c4_17], %14 {strides = array<i32>} : memref<2x22x28xf32, #tpu.memory_space<vmem>>, vector<2x16x4xf32>,
    %cst_18 = arith.constant 0.000000e+00 : f32
    %23 = vector.broadcast %cst_18 : f32 to vector<2x4x4xf32>
    %c0_19 = arith.constant 0 : index
    %c0_20 = arith.constant 0 : index
    %c8 = arith.constant 8 : index
    %24 = vector.load %arg12[%c0_19, %c0_20, %c8] : memref<2x22x28xf32, #tpu.memory_space<vmem>>, vector<2x4x4xf32>
    tpu.vector_store %arg12[%c0_19, %c0_20, %c8], %23 {strides = array<i32>} : memref<2x22x28xf32, #tpu.memory_space<vmem>>, vector<2x4x4xf32>,
    %cst_21 = arith.constant 0.000000e+00 : f32
    %25 = vector.broadcast %cst_21 : f32 to vector<2x2x4xf32>
    %c0_22 = arith.constant 0 : index
    %c20 = arith.constant 20 : index
    %c8_23 = arith.constant 8 : index
    %26 = vector.load %arg12[%c0_22, %c20, %c8_23] : memref<2x22x28xf32, #tpu.memory_space<vmem>>, vector<2x2x4xf32>
    tpu.vector_store %arg12[%c0_22, %c20, %c8_23], %25 {strides = array<i32>} : memref<2x22x28xf32, #tpu.memory_space<vmem>>, vector<2x2x4xf32>,
    %c0_24 = arith.constant 0 : index
    %c4_25 = arith.constant 4 : index
    %c8_26 = arith.constant 8 : index
    %27 = vector.load %arg12[%c0_24, %c4_25, %c8_26] : memref<2x22x28xf32, #tpu.memory_space<vmem>>, vector<2x16x4xf32>
    tpu.vector_store %arg12[%c0_24, %c4_25, %c8_26], %14 {strides = array<i32>} : memref<2x22x28xf32, #tpu.memory_space<vmem>>, vector<2x16x4xf32>,
    %cst_27 = arith.constant 0.000000e+00 : f32
    %28 = vector.broadcast %cst_27 : f32 to vector<2x3x4xf32>
    %c0_28 = arith.constant 0 : index
    %c0_29 = arith.constant 0 : index
    %c12 = arith.constant 12 : index
    %29 = vector.load %arg12[%c0_28, %c0_29, %c12] : memref<2x22x28xf32, #tpu.memory_space<vmem>>, vector<2x3x4xf32>
    tpu.vector_store %arg12[%c0_28, %c0_29, %c12], %28 {strides = array<i32>} : memref<2x22x28xf32, #tpu.memory_space<vmem>>, vector<2x3x4xf32>,
    %cst_30 = arith.constant 0.000000e+00 : f32
    %30 = vector.broadcast %cst_30 : f32 to vector<2x3x4xf32>
    %c0_31 = arith.constant 0 : index
    %c19 = arith.constant 19 : index
    %c12_32 = arith.constant 12 : index
    %31 = vector.load %arg12[%c0_31, %c19, %c12_32] : memref<2x22x28xf32, #tpu.memory_space<vmem>>, vector<2x3x4xf32>
    tpu.vector_store %arg12[%c0_31, %c19, %c12_32], %30 {strides = array<i32>} : memref<2x22x28xf32, #tpu.memory_space<vmem>>, vector<2x3x4xf32>,
    %c0_33 = arith.constant 0 : index
    %c3 = arith.constant 3 : index
    %c12_34 = arith.constant 12 : index
    %32 = vector.load %arg12[%c0_33, %c3, %c12_34] : memref<2x22x28xf32, #tpu.memory_space<vmem>>, vector<2x16x4xf32>
    tpu.vector_store %arg12[%c0_33, %c3, %c12_34], %14 {strides = array<i32>} : memref<2x22x28xf32, #tpu.memory_space<vmem>>, vector<2x16x4xf32>,
    %cst_35 = arith.constant 0.000000e+00 : f32
    %33 = vector.broadcast %cst_35 : f32 to vector<2x2x4xf32>
    %c0_36 = arith.constant 0 : index
    %c0_37 = arith.constant 0 : index
    %c16 = arith.constant 16 : index
    %34 = vector.load %arg12[%c0_36, %c0_37, %c16] : memref<2x22x28xf32, #tpu.memory_space<vmem>>, vector<2x2x4xf32>
    tpu.vector_store %arg12[%c0_36, %c0_37, %c16], %33 {strides = array<i32>} : memref<2x22x28xf32, #tpu.memory_space<vmem>>, vector<2x2x4xf32>,
    %cst_38 = arith.constant 0.000000e+00 : f32
    %35 = vector.broadcast %cst_38 : f32 to vector<2x4x4xf32>
    %c0_39 = arith.constant 0 : index
    %c18 = arith.constant 18 : index
    %c16_40 = arith.constant 16 : index
    %36 = vector.load %arg12[%c0_39, %c18, %c16_40] : memref<2x22x28xf32, #tpu.memory_space<vmem>>, vector<2x4x4xf32>
    tpu.vector_store %arg12[%c0_39, %c18, %c16_40], %35 {strides = array<i32>} : memref<2x22x28xf32, #tpu.memory_space<vmem>>, vector<2x4x4xf32>,
    %c0_41 = arith.constant 0 : index
    %c2 = arith.constant 2 : index
    %c16_42 = arith.constant 16 : index
    %37 = vector.load %arg12[%c0_41, %c2, %c16_42] : memref<2x22x28xf32, #tpu.memory_space<vmem>>, vector<2x16x4xf32>
    tpu.vector_store %arg12[%c0_41, %c2, %c16_42], %14 {strides = array<i32>} : memref<2x22x28xf32, #tpu.memory_space<vmem>>, vector<2x16x4xf32>,
    %cst_43 = arith.constant 0.000000e+00 : f32
    %38 = vector.broadcast %cst_43 : f32 to vector<2x1x4xf32>
    %c0_44 = arith.constant 0 : index
    %c0_45 = arith.constant 0 : index
    %c20_46 = arith.constant 20 : index
    %39 = vector.load %arg12[%c0_44, %c0_45, %c20_46] : memref<2x22x28xf32, #tpu.memory_space<vmem>>, vector<2x1x4xf32>
    tpu.vector_store %arg12[%c0_44, %c0_45, %c20_46], %38 {strides = array<i32>} : memref<2x22x28xf32, #tpu.memory_space<vmem>>, vector<2x1x4xf32>,
    %cst_47 = arith.constant 0.000000e+00 : f32
    %40 = vector.broadcast %cst_47 : f32 to vector<2x5x4xf32>
    %c0_48 = arith.constant 0 : index
    %c17 = arith.constant 17 : index
    %c20_49 = arith.constant 20 : index
    %41 = vector.load %arg12[%c0_48, %c17, %c20_49] : memref<2x22x28xf32, #tpu.memory_space<vmem>>, vector<2x5x4xf32>
    tpu.vector_store %arg12[%c0_48, %c17, %c20_49], %40 {strides = array<i32>} : memref<2x22x28xf32, #tpu.memory_space<vmem>>, vector<2x5x4xf32>,
    %c0_50 = arith.constant 0 : index
    %c1 = arith.constant 1 : index
    %c20_51 = arith.constant 20 : index
    %42 = vector.load %arg12[%c0_50, %c1, %c20_51] : memref<2x22x28xf32, #tpu.memory_space<vmem>>, vector<2x16x4xf32>
    tpu.vector_store %arg12[%c0_50, %c1, %c20_51], %14 {strides = array<i32>} : memref<2x22x28xf32, #tpu.memory_space<vmem>>, vector<2x16x4xf32>,
    %cst_52 = arith.constant 0.000000e+00 : f32
    %43 = vector.broadcast %cst_52 : f32 to vector<2x6x4xf32>
    %c0_53 = arith.constant 0 : index
    %c16_54 = arith.constant 16 : index
    %c24 = arith.constant 24 : index
    %44 = vector.load %arg12[%c0_53, %c16_54, %c24] : memref<2x22x28xf32, #tpu.memory_space<vmem>>, vector<2x6x4xf32>
    tpu.vector_store %arg12[%c0_53, %c16_54, %c24], %43 {strides = array<i32>} : memref<2x22x28xf32, #tpu.memory_space<vmem>>, vector<2x6x4xf32>,
    %c0_55 = arith.constant 0 : index
    %c0_56 = arith.constant 0 : index
    %c24_57 = arith.constant 24 : index
    %45 = vector.load %arg12[%c0_55, %c0_56, %c24_57] : memref<2x22x28xf32, #tpu.memory_space<vmem>>, vector<2x16x4xf32>
    tpu.vector_store %arg12[%c0_55, %c0_56, %c24_57], %14 {strides = array<i32>} : memref<2x22x28xf32, #tpu.memory_space<vmem>>, vector<2x16x4xf32>,
    %c0_58 = arith.constant 0 : index
    %c3_59 = arith.constant 3 : index
    %c0_60 = arith.constant 0 : index
    %46 = vector.load %arg12[%c0_58, %c3_59, %c0_60] : memref<2x22x28xf32, #tpu.memory_space<vmem>>, vector<2x16x28xf32>
    %47 = vector.shape_cast %46 : vector<2x16x28xf32> to vector<32x28xf32>
    %c0_61 = arith.constant 0 : index
    %c0_62 = arith.constant 0 : index
    %48 = vector.load %arg3[%c0_61, %c0_62] : memref<28x8xf32, #tpu.memory_space<vmem>>, vector<28x8xf32>
    %cst_63 = arith.constant dense<0.000000e+00> : vector<32x8xf32>
    %49 = tpu.matmul %47, %48, %cst_63 {dimension_numbers = #tpu.dot_dimension_numbers<[1], [0], [0], [1], [0, 0, 1, 1], [], []>} : vector<32x28xf32>, vector<28x8xf32>, vector<32x8xf32> -> vector<32x8xf32>
    %50 = vector.shape_cast %49 : vector<32x8xf32> to vector<2x16x8xf32>
    %c0_64 = arith.constant 0 : index
    %c0_65 = arith.constant 0 : index
    %c0_66 = arith.constant 0 : index
    %51 = vector.load %arg4[%c0_64, %c0_65, %c0_66] : memref<1x1x8xf32, #tpu.memory_space<vmem>>, vector<1x1x8xf32>
    %52 = vector.broadcast %51 : vector<1x1x8xf32> to vector<2x16x8xf32>
    %53 = arith.addf %50, %52 : vector<2x16x8xf32>
    %cst_67 = arith.constant dense<0.000000e+00> : vector<8xf32>
    %54 = vector.multi_reduction <add>, %53, %cst_67 [0, 1] : vector<2x16x8xf32> to vector<8xf32>
    %55 = vector.shape_cast %54 : vector<8xf32> to vector<1x1x8xf32>
    %cst_68 = arith.constant 3.200000e+01 : f32
    %56 = vector.broadcast %cst_68 : f32 to vector<1x1x8xf32>
    %57 = arith.divf %55, %56 : vector<1x1x8xf32>
    %58 = vector.broadcast %57 : vector<1x1x8xf32> to vector<2x16x8xf32>
    %59 = arith.subf %53, %58 : vector<2x16x8xf32>
    %60 = arith.mulf %59, %59 : vector<2x16x8xf32>
    %cst_69 = arith.constant dense<0.000000e+00> : vector<8xf32>
    %61 = vector.multi_reduction <add>, %60, %cst_69 [0, 1] : vector<2x16x8xf32> to vector<8xf32>
    %62 = vector.shape_cast %61 : vector<8xf32> to vector<1x1x8xf32>
    %cst_70 = arith.constant 3.200000e+01 : f32
    %63 = vector.broadcast %cst_70 : f32 to vector<1x1x8xf32>
    %64 = arith.divf %62, %63 : vector<1x1x8xf32>
    %65 = vector.broadcast %57 : vector<1x1x8xf32> to vector<2x16x8xf32>
    %66 = arith.subf %53, %65 : vector<2x16x8xf32>
    %cst_71 = arith.constant 9.99999974E-6 : f32
    %67 = vector.broadcast %cst_71 : f32 to vector<1x1x8xf32>
    %68 = arith.addf %64, %67 : vector<1x1x8xf32>
    %69 = math.rsqrt %68 : vector<1x1x8xf32>
    %70 = vector.broadcast %69 : vector<1x1x8xf32> to vector<2x16x8xf32>
    %71 = arith.mulf %66, %70 : vector<2x16x8xf32>
    %c0_72 = arith.constant 0 : index
    %c0_73 = arith.constant 0 : index
    %c0_74 = arith.constant 0 : index
    %72 = vector.load %arg5[%c0_72, %c0_73, %c0_74] : memref<1x1x8xf32, #tpu.memory_space<vmem>>, vector<1x1x8xf32>
    %73 = vector.broadcast %72 : vector<1x1x8xf32> to vector<2x16x8xf32>
    %74 = arith.mulf %71, %73 : vector<2x16x8xf32>
    %c0_75 = arith.constant 0 : index
    %c0_76 = arith.constant 0 : index
    %c0_77 = arith.constant 0 : index
    %75 = vector.load %arg6[%c0_75, %c0_76, %c0_77] : memref<1x1x8xf32, #tpu.memory_space<vmem>>, vector<1x1x8xf32>
    %76 = vector.broadcast %75 : vector<1x1x8xf32> to vector<2x16x8xf32>
    %77 = arith.addf %74, %76 : vector<2x16x8xf32>
    %cst_78 = arith.constant 0.000000e+00 : f32
    %78 = vector.broadcast %cst_78 : f32 to vector<2x16x8xf32>
    %79 = arith.maximumf %77, %78 : vector<2x16x8xf32>
    %cst_79 = arith.constant 0.000000e+00 : f32
    %80 = vector.broadcast %cst_79 : f32 to vector<2x6x8xf32>
    %c0_80 = arith.constant 0 : index
    %c0_81 = arith.constant 0 : index
    %c0_82 = arith.constant 0 : index
    %81 = vector.load %arg13[%c0_80, %c0_81, %c0_82] : memref<2x22x56xf32, #tpu.memory_space<vmem>>, vector<2x6x8xf32>
    tpu.vector_store %arg13[%c0_80, %c0_81, %c0_82], %80 {strides = array<i32>} : memref<2x22x56xf32, #tpu.memory_space<vmem>>, vector<2x6x8xf32>,
    %c0_83 = arith.constant 0 : index
    %c6_84 = arith.constant 6 : index
    %c0_85 = arith.constant 0 : index
    %82 = vector.load %arg13[%c0_83, %c6_84, %c0_85] : memref<2x22x56xf32, #tpu.memory_space<vmem>>, vector<2x16x8xf32>
    tpu.vector_store %arg13[%c0_83, %c6_84, %c0_85], %79 {strides = array<i32>} : memref<2x22x56xf32, #tpu.memory_space<vmem>>, vector<2x16x8xf32>,
    %cst_86 = arith.constant 0.000000e+00 : f32
    %83 = vector.broadcast %cst_86 : f32 to vector<2x5x8xf32>
    %c0_87 = arith.constant 0 : index
    %c0_88 = arith.constant 0 : index
    %c8_89 = arith.constant 8 : index
    %84 = vector.load %arg13[%c0_87, %c0_88, %c8_89] : memref<2x22x56xf32, #tpu.memory_space<vmem>>, vector<2x5x8xf32>
    tpu.vector_store %arg13[%c0_87, %c0_88, %c8_89], %83 {strides = array<i32>} : memref<2x22x56xf32, #tpu.memory_space<vmem>>, vector<2x5x8xf32>,
    %cst_90 = arith.constant 0.000000e+00 : f32
    %85 = vector.broadcast %cst_90 : f32 to vector<2x1x8xf32>
    %c0_91 = arith.constant 0 : index
    %c21_92 = arith.constant 21 : index
    %c8_93 = arith.constant 8 : index
    %86 = vector.load %arg13[%c0_91, %c21_92, %c8_93] : memref<2x22x56xf32, #tpu.memory_space<vmem>>, vector<2x1x8xf32>
    tpu.vector_store %arg13[%c0_91, %c21_92, %c8_93], %85 {strides = array<i32>} : memref<2x22x56xf32, #tpu.memory_space<vmem>>, vector<2x1x8xf32>,
    %c0_94 = arith.constant 0 : index
    %c5_95 = arith.constant 5 : index
    %c8_96 = arith.constant 8 : index
    %87 = vector.load %arg13[%c0_94, %c5_95, %c8_96] : memref<2x22x56xf32, #tpu.memory_space<vmem>>, vector<2x16x8xf32>
    tpu.vector_store %arg13[%c0_94, %c5_95, %c8_96], %79 {strides = array<i32>} : memref<2x22x56xf32, #tpu.memory_space<vmem>>, vector<2x16x8xf32>,
    %cst_97 = arith.constant 0.000000e+00 : f32
    %88 = vector.broadcast %cst_97 : f32 to vector<2x4x8xf32>
    %c0_98 = arith.constant 0 : index
    %c0_99 = arith.constant 0 : index
    %c16_100 = arith.constant 16 : index
    %89 = vector.load %arg13[%c0_98, %c0_99, %c16_100] : memref<2x22x56xf32, #tpu.memory_space<vmem>>, vector<2x4x8xf32>
    tpu.vector_store %arg13[%c0_98, %c0_99, %c16_100], %88 {strides = array<i32>} : memref<2x22x56xf32, #tpu.memory_space<vmem>>, vector<2x4x8xf32>,
    %cst_101 = arith.constant 0.000000e+00 : f32
    %90 = vector.broadcast %cst_101 : f32 to vector<2x2x8xf32>
    %c0_102 = arith.constant 0 : index
    %c20_103 = arith.constant 20 : index
    %c16_104 = arith.constant 16 : index
    %91 = vector.load %arg13[%c0_102, %c20_103, %c16_104] : memref<2x22x56xf32, #tpu.memory_space<vmem>>, vector<2x2x8xf32>
    tpu.vector_store %arg13[%c0_102, %c20_103, %c16_104], %90 {strides = array<i32>} : memref<2x22x56xf32, #tpu.memory_space<vmem>>, vector<2x2x8xf32>,
    %c0_105 = arith.constant 0 : index
    %c4_106 = arith.constant 4 : index
    %c16_107 = arith.constant 16 : index
    %92 = vector.load %arg13[%c0_105, %c4_106, %c16_107] : memref<2x22x56xf32, #tpu.memory_space<vmem>>, vector<2x16x8xf32>
    tpu.vector_store %arg13[%c0_105, %c4_106, %c16_107], %79 {strides = array<i32>} : memref<2x22x56xf32, #tpu.memory_space<vmem>>, vector<2x16x8xf32>,
    %cst_108 = arith.constant 0.000000e+00 : f32
    %93 = vector.broadcast %cst_108 : f32 to vector<2x3x8xf32>
    %c0_109 = arith.constant 0 : index
    %c0_110 = arith.constant 0 : index
    %c24_111 = arith.constant 24 : index
    %94 = vector.load %arg13[%c0_109, %c0_110, %c24_111] : memref<2x22x56xf32, #tpu.memory_space<vmem>>, vector<2x3x8xf32>
    tpu.vector_store %arg13[%c0_109, %c0_110, %c24_111], %93 {strides = array<i32>} : memref<2x22x56xf32, #tpu.memory_space<vmem>>, vector<2x3x8xf32>,
    %cst_112 = arith.constant 0.000000e+00 : f32
    %95 = vector.broadcast %cst_112 : f32 to vector<2x3x8xf32>
    %c0_113 = arith.constant 0 : index
    %c19_114 = arith.constant 19 : index
    %c24_115 = arith.constant 24 : index
    %96 = vector.load %arg13[%c0_113, %c19_114, %c24_115] : memref<2x22x56xf32, #tpu.memory_space<vmem>>, vector<2x3x8xf32>
    tpu.vector_store %arg13[%c0_113, %c19_114, %c24_115], %95 {strides = array<i32>} : memref<2x22x56xf32, #tpu.memory_space<vmem>>, vector<2x3x8xf32>,
    %c0_116 = arith.constant 0 : index
    %c3_117 = arith.constant 3 : index
    %c24_118 = arith.constant 24 : index
    %97 = vector.load %arg13[%c0_116, %c3_117, %c24_118] : memref<2x22x56xf32, #tpu.memory_space<vmem>>, vector<2x16x8xf32>
    tpu.vector_store %arg13[%c0_116, %c3_117, %c24_118], %79 {strides = array<i32>} : memref<2x22x56xf32, #tpu.memory_space<vmem>>, vector<2x16x8xf32>,
    %cst_119 = arith.constant 0.000000e+00 : f32
    %98 = vector.broadcast %cst_119 : f32 to vector<2x2x8xf32>
    %c0_120 = arith.constant 0 : index
    %c0_121 = arith.constant 0 : index
    %c32 = arith.constant 32 : index
    %99 = vector.load %arg13[%c0_120, %c0_121, %c32] : memref<2x22x56xf32, #tpu.memory_space<vmem>>, vector<2x2x8xf32>
    tpu.vector_store %arg13[%c0_120, %c0_121, %c32], %98 {strides = array<i32>} : memref<2x22x56xf32, #tpu.memory_space<vmem>>, vector<2x2x8xf32>,
    %cst_122 = arith.constant 0.000000e+00 : f32
    %100 = vector.broadcast %cst_122 : f32 to vector<2x4x8xf32>
    %c0_123 = arith.constant 0 : index
    %c18_124 = arith.constant 18 : index
    %c32_125 = arith.constant 32 : index
    %101 = vector.load %arg13[%c0_123, %c18_124, %c32_125] : memref<2x22x56xf32, #tpu.memory_space<vmem>>, vector<2x4x8xf32>
    tpu.vector_store %arg13[%c0_123, %c18_124, %c32_125], %100 {strides = array<i32>} : memref<2x22x56xf32, #tpu.memory_space<vmem>>, vector<2x4x8xf32>,
    %c0_126 = arith.constant 0 : index
    %c2_127 = arith.constant 2 : index
    %c32_128 = arith.constant 32 : index
    %102 = vector.load %arg13[%c0_126, %c2_127, %c32_128] : memref<2x22x56xf32, #tpu.memory_space<vmem>>, vector<2x16x8xf32>
    tpu.vector_store %arg13[%c0_126, %c2_127, %c32_128], %79 {strides = array<i32>} : memref<2x22x56xf32, #tpu.memory_space<vmem>>, vector<2x16x8xf32>,
    %cst_129 = arith.constant 0.000000e+00 : f32
    %103 = vector.broadcast %cst_129 : f32 to vector<2x1x8xf32>
    %c0_130 = arith.constant 0 : index
    %c0_131 = arith.constant 0 : index
    %c40 = arith.constant 40 : index
    %104 = vector.load %arg13[%c0_130, %c0_131, %c40] : memref<2x22x56xf32, #tpu.memory_space<vmem>>, vector<2x1x8xf32>
    tpu.vector_store %arg13[%c0_130, %c0_131, %c40], %103 {strides = array<i32>} : memref<2x22x56xf32, #tpu.memory_space<vmem>>, vector<2x1x8xf32>,
    %cst_132 = arith.constant 0.000000e+00 : f32
    %105 = vector.broadcast %cst_132 : f32 to vector<2x5x8xf32>
    %c0_133 = arith.constant 0 : index
    %c17_134 = arith.constant 17 : index
    %c40_135 = arith.constant 40 : index
    %106 = vector.load %arg13[%c0_133, %c17_134, %c40_135] : memref<2x22x56xf32, #tpu.memory_space<vmem>>, vector<2x5x8xf32>
    tpu.vector_store %arg13[%c0_133, %c17_134, %c40_135], %105 {strides = array<i32>} : memref<2x22x56xf32, #tpu.memory_space<vmem>>, vector<2x5x8xf32>,
    %c0_136 = arith.constant 0 : index
    %c1_137 = arith.constant 1 : index
    %c40_138 = arith.constant 40 : index
    %107 = vector.load %arg13[%c0_136, %c1_137, %c40_138] : memref<2x22x56xf32, #tpu.memory_space<vmem>>, vector<2x16x8xf32>
    tpu.vector_store %arg13[%c0_136, %c1_137, %c40_138], %79 {strides = array<i32>} : memref<2x22x56xf32, #tpu.memory_space<vmem>>, vector<2x16x8xf32>,
    %cst_139 = arith.constant 0.000000e+00 : f32
    %108 = vector.broadcast %cst_139 : f32 to vector<2x6x8xf32>
    %c0_140 = arith.constant 0 : index
    %c16_141 = arith.constant 16 : index
    %c48 = arith.constant 48 : index
    %109 = vector.load %arg13[%c0_140, %c16_141, %c48] : memref<2x22x56xf32, #tpu.memory_space<vmem>>, vector<2x6x8xf32>
    tpu.vector_store %arg13[%c0_140, %c16_141, %c48], %108 {strides = array<i32>} : memref<2x22x56xf32, #tpu.memory_space<vmem>>, vector<2x6x8xf32>,
    %c0_142 = arith.constant 0 : index
    %c0_143 = arith.constant 0 : index
    %c48_144 = arith.constant 48 : index
    %110 = vector.load %arg13[%c0_142, %c0_143, %c48_144] : memref<2x22x56xf32, #tpu.memory_space<vmem>>, vector<2x16x8xf32>
    tpu.vector_store %arg13[%c0_142, %c0_143, %c48_144], %79 {strides = array<i32>} : memref<2x22x56xf32, #tpu.memory_space<vmem>>, vector<2x16x8xf32>,
    %c0_145 = arith.constant 0 : index
    %c3_146 = arith.constant 3 : index
    %c0_147 = arith.constant 0 : index
    %111 = vector.load %arg13[%c0_145, %c3_146, %c0_147] : memref<2x22x56xf32, #tpu.memory_space<vmem>>, vector<2x16x56xf32>
    %112 = vector.shape_cast %111 : vector<2x16x56xf32> to vector<32x56xf32>
    %c0_148 = arith.constant 0 : index
    %c0_149 = arith.constant 0 : index
    %113 = vector.load %arg7[%c0_148, %c0_149] : memref<56x8xf32, #tpu.memory_space<vmem>>, vector<56x8xf32>
    %cst_150 = arith.constant dense<0.000000e+00> : vector<32x8xf32>
    %114 = tpu.matmul %112, %113, %cst_150 {dimension_numbers = #tpu.dot_dimension_numbers<[1], [0], [0], [1], [0, 0, 1, 1], [], []>} : vector<32x56xf32>, vector<56x8xf32>, vector<32x8xf32> -> vector<32x8xf32>
    %115 = vector.shape_cast %114 : vector<32x8xf32> to vector<2x16x8xf32>
    %c0_151 = arith.constant 0 : index
    %c0_152 = arith.constant 0 : index
    %c0_153 = arith.constant 0 : index
    %116 = vector.load %arg8[%c0_151, %c0_152, %c0_153] : memref<1x1x8xf32, #tpu.memory_space<vmem>>, vector<1x1x8xf32>
    %117 = vector.broadcast %116 : vector<1x1x8xf32> to vector<2x16x8xf32>
    %118 = arith.addf %115, %117 : vector<2x16x8xf32>
    %cst_154 = arith.constant dense<0.000000e+00> : vector<8xf32>
    %119 = vector.multi_reduction <add>, %118, %cst_154 [0, 1] : vector<2x16x8xf32> to vector<8xf32>
    %120 = vector.shape_cast %119 : vector<8xf32> to vector<1x1x8xf32>
    %cst_155 = arith.constant 3.200000e+01 : f32
    %121 = vector.broadcast %cst_155 : f32 to vector<1x1x8xf32>
    %122 = arith.divf %120, %121 : vector<1x1x8xf32>
    %123 = vector.broadcast %122 : vector<1x1x8xf32> to vector<2x16x8xf32>
    %124 = arith.subf %118, %123 : vector<2x16x8xf32>
    %125 = arith.mulf %124, %124 : vector<2x16x8xf32>
    %cst_156 = arith.constant dense<0.000000e+00> : vector<8xf32>
    %126 = vector.multi_reduction <add>, %125, %cst_156 [0, 1] : vector<2x16x8xf32> to vector<8xf32>
    %127 = vector.shape_cast %126 : vector<8xf32> to vector<1x1x8xf32>
    %cst_157 = arith.constant 3.200000e+01 : f32
    %128 = vector.broadcast %cst_157 : f32 to vector<1x1x8xf32>
    %129 = arith.divf %127, %128 : vector<1x1x8xf32>
    %130 = vector.broadcast %122 : vector<1x1x8xf32> to vector<2x16x8xf32>
    %131 = arith.subf %118, %130 : vector<2x16x8xf32>
    %cst_158 = arith.constant 9.99999974E-6 : f32
    %132 = vector.broadcast %cst_158 : f32 to vector<1x1x8xf32>
    %133 = arith.addf %129, %132 : vector<1x1x8xf32>
    %134 = math.rsqrt %133 : vector<1x1x8xf32>
    %135 = vector.broadcast %134 : vector<1x1x8xf32> to vector<2x16x8xf32>
    %136 = arith.mulf %131, %135 : vector<2x16x8xf32>
    %c0_159 = arith.constant 0 : index
    %c0_160 = arith.constant 0 : index
    %c0_161 = arith.constant 0 : index
    %137 = vector.load %arg9[%c0_159, %c0_160, %c0_161] : memref<1x1x8xf32, #tpu.memory_space<vmem>>, vector<1x1x8xf32>
    %138 = vector.broadcast %137 : vector<1x1x8xf32> to vector<2x16x8xf32>
    %139 = arith.mulf %136, %138 : vector<2x16x8xf32>
    %c0_162 = arith.constant 0 : index
    %c0_163 = arith.constant 0 : index
    %c0_164 = arith.constant 0 : index
    %140 = vector.load %arg10[%c0_162, %c0_163, %c0_164] : memref<1x1x8xf32, #tpu.memory_space<vmem>>, vector<1x1x8xf32>
    %141 = vector.broadcast %140 : vector<1x1x8xf32> to vector<2x16x8xf32>
    %142 = arith.addf %139, %141 : vector<2x16x8xf32>
    %cst_165 = arith.constant 0.000000e+00 : f32
    %143 = vector.broadcast %cst_165 : f32 to vector<2x16x8xf32>
    %144 = arith.maximumf %142, %143 : vector<2x16x8xf32>
    %c0_166 = arith.constant 0 : index
    %c0_167 = arith.constant 0 : index
    %c0_168 = arith.constant 0 : index
    %145 = vector.load %arg11[%c0_166, %c0_167, %c0_168] : memref<2x16x8xf32, #tpu.memory_space<vmem>>, vector<2x16x8xf32>
    tpu.vector_store %arg11[%c0_166, %c0_167, %c0_168], %144 {strides = array<i32>} : memref<2x16x8xf32, #tpu.memory_space<vmem>>, vector<2x16x8xf32>,
    return
  }
  func.func @transform_0(%arg0: i32) -> (i32, i32, i32) {
    %c0_i32 = arith.constant 0 : i32
    %c0_i32_0 = arith.constant 0 : i32
    %c0_i32_1 = arith.constant 0 : i32
    %c0_i32_2 = arith.constant 0 : i32
    return %c0_i32, %c0_i32_0, %c0_i32_1 : i32, i32, i32
  }
  func.func @transform_1(%arg0: i32) -> (i32, i32, i32) {
    %c0_i32 = arith.constant 0 : i32
    %c0_i32_0 = arith.constant 0 : i32
    %c0_i32_1 = arith.constant 0 : i32
    %c0_i32_2 = arith.constant 0 : i32
    return %c0_i32, %c0_i32_0, %c0_i32_1 : i32, i32, i32
  }
  func.func @transform_2(%arg0: i32) -> (i32, i32) {
    %c0_i32 = arith.constant 0 : i32
    %c0_i32_0 = arith.constant 0 : i32
    %c0_i32_1 = arith.constant 0 : i32
    return %c0_i32, %c0_i32_0 : i32, i32
  }
  func.func @transform_3(%arg0: i32) -> (i32, i32, i32) {
    %c0_i32 = arith.constant 0 : i32
    %c0_i32_0 = arith.constant 0 : i32
    %c0_i32_1 = arith.constant 0 : i32
    %c0_i32_2 = arith.constant 0 : i32
    return %c0_i32, %c0_i32_0, %c0_i32_1 : i32, i32, i32
  }
  func.func @transform_4(%arg0: i32) -> (i32, i32, i32) {
    %c0_i32 = arith.constant 0 : i32
    %c0_i32_0 = arith.constant 0 : i32
    %c0_i32_1 = arith.constant 0 : i32
    %c0_i32_2 = arith.constant 0 : i32
    return %c0_i32, %c0_i32_0, %c0_i32_1 : i32, i32, i32
  }
  func.func @transform_5(%arg0: i32) -> (i32, i32, i32) {
    %c0_i32 = arith.constant 0 : i32
    %c0_i32_0 = arith.constant 0 : i32
    %c0_i32_1 = arith.constant 0 : i32
    %c0_i32_2 = arith.constant 0 : i32
    return %c0_i32, %c0_i32_0, %c0_i32_1 : i32, i32, i32
  }
  func.func @transform_6(%arg0: i32) -> (i32, i32) {
    %c0_i32 = arith.constant 0 : i32
    %c0_i32_0 = arith.constant 0 : i32
    %c0_i32_1 = arith.constant 0 : i32
    return %c0_i32, %c0_i32_0 : i32, i32
  }
  func.func @transform_7(%arg0: i32) -> (i32, i32, i32) {
    %c0_i32 = arith.constant 0 : i32
    %c0_i32_0 = arith.constant 0 : i32
    %c0_i32_1 = arith.constant 0 : i32
    %c0_i32_2 = arith.constant 0 : i32
    return %c0_i32, %c0_i32_0, %c0_i32_1 : i32, i32, i32
  }
  func.func @transform_8(%arg0: i32) -> (i32, i32, i32) {
    %c0_i32 = arith.constant 0 : i32
    %c0_i32_0 = arith.constant 0 : i32
    %c0_i32_1 = arith.constant 0 : i32
    %c0_i32_2 = arith.constant 0 : i32
    return %c0_i32, %c0_i32_0, %c0_i32_1 : i32, i32, i32
  }
  func.func @transform_9(%arg0: i32) -> (i32, i32, i32) {
    %c0_i32 = arith.constant 0 : i32
    %c0_i32_0 = arith.constant 0 : i32
    %c0_i32_1 = arith.constant 0 : i32
    %c0_i32_2 = arith.constant 0 : i32
    return %c0_i32, %c0_i32_0, %c0_i32_1 : i32, i32, i32
  }
  func.func @transform_10(%arg0: i32) -> (i32, i32, i32) {
    %c0_i32 = arith.constant 0 : i32
    %c0_i32_0 = arith.constant 0 : i32
    %c0_i32_1 = arith.constant 0 : i32
    %c0_i32_2 = arith.constant 0 : i32
    return %c0_i32, %c0_i32_0, %c0_i32_1 : i32, i32, i32
  }
}

</mosaic_0001>

<bundles_post_ra>
// kernel: down_forward.1
= control target key start
LH: loop header
LB: loop body
LE: loop exit
PB: predicated region body
PF: predicated region fallthrough
CT: control target
= control target key end

     0   :  { %s725_s15 = smov 116   ;;  %s726_s16 = smov 120   ;;  %vm110_vm3 = vcmask 31744   ;;  %vm107_vm13 = vcmask 29696   ;;  %v734_v32 = vmov 0.0   ;;  %vm115_vm14 = vcmask 61472   ;;  %s1041_s0 = inlined_call_operand.vmem [shape: f32[2,16,16], index: 0, kind: input, shape index: {}]   ;;  %s1042_s1 = inlined_call_operand.vmem [shape: s32[2,16,4], index: 1, kind: input, shape index: {}]   ;;  %s1043_s3 = inlined_call_operand.vmem [shape: f32[1,1,8], index: 3, kind: input, shape index: {}]   ;;  %s1044_s2 = inlined_call_operand.vmem [shape: f32[28,8], index: 2, kind: input, shape index: {}]   ;;  %s1045_s4 = inlined_call_operand.vmem [shape: f32[1,1,8], index: 4, kind: input, shape index: {}]   ;;  %s1046_s5 = inlined_call_operand.vmem [shape: f32[1,1,8], index: 5, kind: input, shape index: {}]   ;;  %s1047_s7 = inlined_call_operand.vmem [shape: f32[1,1,8], index: 7, kind: input, shape index: {}]   ;;  %s1048_s6 = inlined_call_operand.vmem [shape: f32[56,8], index: 6, kind: input, shape index: {}]   ;;  %s1049_s8 = inlined_call_operand.vmem [shape: f32[1,1,8], index: 8, kind: input, shape index: {}]   ;;  %s1050_s9 = inlined_call_operand.vmem [shape: f32[1,1,8], index: 9, kind: input, shape index: {}]   ;;  %s1051_s10 = inlined_call_operand.vmem [shape: f32[2,16,8], index: 10, kind: output, shape index: {}]  }
   0x1   :  { %v35_v0 = vld [vmem:[%s1041_s0] sm:$0xff]  ;;  %s727_s17 = smov 124   ;;  %v36_v1 = vld [vmem:[%s1041_s0 + $0x8] sm:$0xff]  ;;  %v803_v2 = vld [vmem:[%s1041_s0 + $0x18] sm:$0xff]  ;;  %s728_s27 = smov 8   ;;  %vm142_vm15 = vcmask 93248  }
   0x2   :  { %71 = vrot.lane.b32.xlu1 %v35_v0, %s725_s15  ;;  %59 = vrot.lane.b32.xlu0 %v35_v0, %s726_s16  ;;  %v37_v3 = vld [vmem:[%s1041_s0 + $0x10] sm:$0xff]  ;;  %v39_v4 = vld [vmem:[%s1042_s1] sm:$0xff]  ;;  %s729_s28 = smov 4   ;;  %s730_s29 = smov 12   ;;  %109 = vst.msk [vmem:[#allocation2 + $0x18] sm:$0x3f] %vm107_vm13, %v734_v32 }
   0x3   :  { %87 = vrot.lane.b32.xlu2 %v35_v0, %s727_s17  ;;  %vm51_vm0 = vcmp.eq.s32.totalorder %v39_v4, 2  ;;  %vm47_vm1 = vcmp.eq.s32.totalorder %v39_v4, 1  ;;  %vm43_vm2 = vcmp.eq.s32.totalorder %v39_v4, 0  ;;  %v40_v11 = vld [vmem:[%s1042_s1 + $0x8] sm:$0xff]  ;;  %v41_v20 = vld [vmem:[%s1042_s1 + $0x10] sm:$0xff]  ;;  %v42_v22 = vld [vmem:[%s1042_s1 + $0x18] sm:$0xff] }
   0x4   :  { %vm52_vm4 = vcmp.eq.s32.totalorder %v40_v11, 2  ;;  %vm48_vm5 = vcmp.eq.s32.totalorder %v40_v11, 1  ;;  %vm44_vm6 = vcmp.eq.s32.totalorder %v40_v11, 0  ;;  %vm53_vm7 = vcmp.eq.s32.totalorder %v41_v20, 2  ;;  %s731_s14 = smov 20   ;;  %s733_s1 = smov 24  }
   0x5   :  { %vm49_vm8 = vcmp.eq.s32.totalorder %v41_v20, 1  ;;  %vm54_vm9 = vcmp.eq.s32.totalorder %v42_v22, 2  ;;  %vm45_vm10 = vcmp.eq.s32.totalorder %v41_v20, 0  ;;  %vm50_vm11 = vcmp.eq.s32.totalorder %v42_v22, 1  ;;  %108 = vst.msk [vmem:[#allocation2] sm:$0x3f] %vm107_vm13, %v734_v32 }
   0x6   :  { %vm46_vm12 = vcmp.eq.s32.totalorder %v42_v22, 0  ;;  %116 = vst.msk [vmem:[#allocation2] sm:$0x1f] %vm115_vm14, %v734_v32  ;;  %v260_v38 = vld [vmem:[%s1044_s2 + $0x18] sm:$0xf]  ;;  %v259_v39 = vld [vmem:[%s1044_s2 + $0x10] sm:$0xff] }
   0x7   :  { %117 = vst.msk [vmem:[#allocation2 + $0x18] sm:$0x1f] %vm115_vm14, %v734_v32  ;;  %v258_v40 = vld [vmem:[%s1044_s2 + $0x8] sm:$0xff]  ;;  %v257_v43 = vld [vmem:[%s1044_s2] sm:$0xff] }
   0x8   :  { %143 = vst.msk [vmem:[#allocation2] sm:$0xf] %vm142_vm15, %v734_v32 }
   0x9   :  { %144 = vst.msk [vmem:[#allocation2 + $0x18] sm:$0xf] %vm142_vm15, %v734_v32 }
   0xa   :  { %73 = vrot.lane.b32.xlu1 %v36_v1, %s725_s15  ;;  %61 = vrot.lane.b32.xlu0 %v36_v1, %s726_s16 }
   0xb   :  { %89 = vrot.lane.b32.xlu2 %v36_v1, %s727_s17 }
  0x12   :  { %65 = vrot.lane.b32.xlu1 %v803_v2, %s726_s16  ;;  %63 = vrot.lane.b32.xlu0 %v37_v3, %s726_s16 }
  0x13   :  { %75 = vrot.lane.b32.xlu2 %v37_v3, %s725_s15 }
  0x1a   :  { %91 = vrot.lane.b32.xlu1 %v37_v3, %s727_s17  ;;  %77 = vrot.lane.b32.xlu0 %v803_v2, %s725_s15  ;;  %s732_s15 = smov 16  }
  0x1b   :  { %93 = vrot.lane.b32.xlu2 %v803_v2, %s727_s17 }
  0x5d   :  { %v88_v5 = vpop.permute.xlu2 %87 }
  0x65   :  { %v90_v12 = vpop.permute.xlu2 %89 }
  0x6d   :  { %v76_v18 = vpop.permute.xlu2 %75 }
  0x74   :  { %v72_v6 = vpop.permute.xlu1 %71  ;;  %v60_v7 = vpop.permute.xlu0 %59 }
  0x75   :  { %v83_v8 = vsel %vm51_vm0, %v60_v7, %v72_v6  ;;  %v94_v24 = vpop.permute.xlu2 %93  ;;  %vm137_vm0 = vcmask 64544  }
  0x76   :  { %v99_v9 = vsel %vm47_vm1, %v88_v5, %v83_v8  ;;  %vm160_vm1 = vcmask 97344  }
  0x77   :  { %v103_v10 = vsel %vm43_vm2, %v35_v0, %v99_v9  ;;  %vm274_vm2 = vcmask 1043456  }
  0x78   :  { %148 = vrot.lane.b32.xlu2 %v103_v10, %s728_s27  ;;  %125 = vrot.lane.b32.xlu0 %v103_v10, %s729_s28  ;;  %111 = vst.msk [vmem:[#allocation2 + $0x6] sm:$0xff] %vm110_vm3, %v103_v10 }
  0x79   :  { %679 = vmatpush.msk.msra.mxu0 %vm274_vm2, %v260_v38  ;;  %688 = vmatpush.msk.msra.mxu3 %vm274_vm2, %v260_v38  ;;  %vm428_vm2 = vcmask 191616  }
  0x7b   :  { %291 = vmatpush.msra.mxu0 %v259_v39  ;;  %689 = vmatpush.msra.mxu3 %v259_v39 }
  0x7c   :  { %v74_v13 = vpop.permute.xlu1 %73  ;;  %v62_v14 = vpop.permute.xlu0 %61 }
  0x7d   :  { %v84_v15 = vsel %vm52_vm4, %v62_v14, %v74_v13  ;;  %292 = vmatpush.msra.mxu0 %v258_v40  ;;  %690 = vmatpush.msra.mxu3 %v258_v40  ;;  %vm190_vm4 = vcmask 158848  }
  0x7e   :  { %v100_v16 = vsel %vm48_vm5, %v90_v12, %v84_v15  ;;  %vm205_vm5 = vcmask 162944  }
  0x7f   :  { %v104_v17 = vsel %vm44_vm6, %v36_v1, %v100_v16  ;;  %293 = vmatpush.msra.mxu0 %v257_v43  ;;  %691 = vmatpush.msra.mxu3 %v257_v43  ;;  %vm228_vm6 = vcmask 195744  }
  0x80   :  { %172 = vrot.lane.b32.xlu2 %v104_v17, %s730_s29  ;;  %150 = vrot.lane.b32.xlu0 %v104_v17, %s728_s27  ;;  %112 = vst.msk [vmem:[#allocation2 + $0xe] sm:$0xff] %vm110_vm3, %v104_v17 }
  0x81   :  { %127 = vrot.lane.b32.xlu1 %v104_v17, %s729_s28 }
  0x84   :  { %v66_v19 = vpop.permute.xlu1 %65  ;;  %v64_v21 = vpop.permute.xlu0 %63 }
  0x85   :  { %v85_v23 = vsel %vm53_vm7, %v64_v21, %v76_v18  ;;  %vm213_vm7 = vcmask 192672  }
  0x88   :  { %216 = vrot.lane.b32.xlu2 %v103_v10, %s731_s14  ;;  %193 = vrot.lane.b32.xlu0 %v103_v10, %s732_s15 }
  0x89   :  { %170 = vrot.lane.b32.xlu1 %v103_v10, %s730_s29 }
  0x8c   :  { %v92_v25 = vpop.permute.xlu1 %91  ;;  %v78_v26 = vpop.permute.xlu0 %77 }
  0x8d   :  { %v101_v27 = vsel %vm49_vm8, %v92_v25, %v85_v23  ;;  %v86_v28 = vsel %vm54_vm9, %v66_v19, %v78_v26  ;;  %vm233_vm8 = vcmask 226496   ;;  %vm248_vm9 = vcmask 228544  }
  0x8e   :  { %v105_v29 = vsel %vm45_vm10, %v37_v3, %v101_v27  ;;  %v102_v30 = vsel %vm50_vm11, %v94_v24, %v86_v28  ;;  %vm261_vm10 = vcmask 228352   ;;  %v713_v3 = vld [vmem:[%s1043_s3] ss:$0 sm:$0xff]  ;;  %vm315_vm11 = vcmask 64512  }
  0x8f   :  { %v106_v31 = vsel %vm46_vm12, %v803_v2, %v102_v30  ;;  %113 = vst.msk [vmem:[#allocation2 + $0x1e] sm:$0xff] %vm110_vm3, %v105_v29  ;;  %v735_v2 = vmov 32.0  }
  0x90   :  { %218 = vrot.lane.b32.xlu0 %v104_v17, %s731_s14  ;;  %129 = vrot.lane.b32.xlu2 %v105_v29, %s729_s28  ;;  %114 = vst.msk [vmem:[#allocation2 + $0x26] sm:$0xff] %vm110_vm3, %v106_v31  ;;  %vm182_vm3 = vcmask 130144   ;;  %719 = vrcp.f32 %v735_v2 }
  0x91   :  { %195 = vrot.lane.b32.xlu1 %v104_v17, %s732_s15 }
  0x96   :  { %v720_v9 = vpop.eup %719 }
  0x97   :  { %v330_v13 = vmul.f32 32.0, %v720_v9  ;;  %vm334_vm12 = vweird.f32 %v720_v9 }
  0x98   :  { %154 = vrot.lane.b32.xlu2 %v106_v31, %s728_s27  ;;  %131 = vrot.lane.b32.xlu0 %v106_v31, %s729_s28 }
  0x99   :  { %238 = vrot.lane.b32.xlu1 %v104_v17, %s733_s1  ;;  %v331_v19 = vsub.f32 1.0, %v330_v13 }
  0x9b   :  { %v332_v22 = vmul.f32 %v720_v9, %v331_v19 }
  0x9d   :  { %v333_v25 = vadd.f32 %v720_v9, %v332_v22 }
  0x9f   :  { %v917_v28 = vsel %vm334_vm12, %v720_v9, %v333_v25  ;;  %vm534_vm12 = vcmask 458112  }
  0xa0   :  { %197 = vrot.lane.b32.xlu2 %v105_v29, %s732_s15  ;;  %174 = vrot.lane.b32.xlu0 %v105_v29, %s730_s29 }
  0xa1   :  { %152 = vrot.lane.b32.xlu1 %v105_v29, %s728_s27 }
  0xa8   :  { %222 = vrot.lane.b32.xlu2 %v106_v31, %s731_s14  ;;  %199 = vrot.lane.b32.xlu0 %v106_v31, %s732_s15 }
  0xa9   :  { %176 = vrot.lane.b32.xlu1 %v106_v31, %s730_s29 }
  0xb0   :  { %236 = vrot.lane.b32.xlu2 %v103_v10, %s733_s1  ;;  %240 = vrot.lane.b32.xlu0 %v105_v29, %s733_s1 }
  0xb1   :  { %220 = vrot.lane.b32.xlu1 %v105_v29, %s731_s14 }
  0xb9   :  { %242 = vrot.lane.b32.xlu1 %v106_v31, %s733_s1 }
  0xd2   :  { %v149_v33 = vpop.permute.xlu2 %148 }
  0xda   :  { %v173_v34 = vpop.permute.xlu2 %172 }
  0xe2   :  { %v217_v35 = vpop.permute.xlu2 %216 }
  0xea   :  { %v130_v36 = vpop.permute.xlu2 %129  ;;  %v126_v37 = vpop.permute.xlu0 %125 }
  0xeb   :  { %140 = vst.msk [vmem:[#allocation2 + $0x1d] sm:$0xff] %vm137_vm0, %v130_v36 }
  0xec   :  { %138 = vst.msk [vmem:[#allocation2 + $0x5] sm:$0xff] %vm137_vm0, %v126_v37 }
  0xed   :  { %161 = vst.msk [vmem:[#allocation2 + $0x4] sm:$0xff] %vm160_vm1, %v149_v33 }
  0xf2   :  { %v155_v41 = vpop.permute.xlu2 %154  ;;  %v151_v42 = vpop.permute.xlu0 %150 }
  0xf3   :  { %v128_v44 = vpop.permute.xlu1 %127 }
  0xf4   :  { %139 = vst.msk [vmem:[#allocation2 + $0xd] sm:$0xff] %vm137_vm0, %v128_v44 }
  0xf5   :  { %162 = vst.msk [vmem:[#allocation2 + $0xc] sm:$0xff] %vm160_vm1, %v151_v42 }
  0xf6   :  { %184 = vst.msk [vmem:[#allocation2 + $0xb] sm:$0xff] %vm182_vm3, %v173_v34 }
  0xf7   :  { %191 = vst.msk [vmem:[#allocation2 + $0x12] sm:$0xf] %vm190_vm4, %v734_v32 }
  0xfa   :  { %v198_v45 = vpop.permute.xlu2 %197  ;;  %v194_v46 = vpop.permute.xlu0 %193 }
  0xfb   :  { %v171_v47 = vpop.permute.xlu1 %170 }
  0xfc   :  { %183 = vst.msk [vmem:[#allocation2 + $0x3] sm:$0xff] %vm182_vm3, %v171_v47 }
  0xfd   :  { %206 = vst.msk [vmem:[#allocation2 + $0x2] sm:$0xff] %vm205_vm5, %v194_v46 }
  0xfe   :  { %229 = vst.msk [vmem:[#allocation2 + $0x1] sm:$0xff] %vm228_vm6, %v217_v35 }
 0x102   :  { %v223_v48 = vpop.permute.xlu2 %222  ;;  %v219_v49 = vpop.permute.xlu0 %218 }
 0x103   :  { %v196_v50 = vpop.permute.xlu1 %195 }
 0x104   :  { %207 = vst.msk [vmem:[#allocation2 + $0xa] sm:$0xff] %vm205_vm5, %v196_v50 }
 0x105   :  { %214 = vst.msk [vmem:[#allocation2 + $0x11] sm:$0x1f] %vm213_vm7, %v734_v32 }
 0x106   :  { %230 = vst.msk [vmem:[#allocation2 + $0x9] sm:$0xff] %vm228_vm6, %v219_v49 }
 0x107   :  { %234 = vst.msk [vmem:[#allocation2 + $0x10] sm:$0x3f] %vm233_vm8, %v734_v32 }
 0x10a   :  { %v237_v51 = vpop.permute.xlu2 %236  ;;  %v132_v52 = vpop.permute.xlu0 %131 }
 0x10b   :  { %v239_v53 = vpop.permute.xlu1 %238  ;;  %249 = vst.msk [vmem:[#allocation2] sm:$0xff] %vm248_vm9, %v237_v51 }
 0x10c   :  { %250 = vst.msk [vmem:[#allocation2 + $0x8] sm:$0xff] %vm248_vm9, %v239_v53 }
 0x10d   :  { %141 = vst.msk [vmem:[#allocation2 + $0x25] sm:$0xff] %vm137_vm0, %v132_v52  ;;  %vm394_vm0 = vcmask 62464  }
 0x10e   :  { %164 = vst.msk [vmem:[#allocation2 + $0x24] sm:$0xff] %vm160_vm1, %v155_v41 }
 0x10f   :  { %396 = vst.msk [vmem:[#allocation3 + $0x18] sm:$0x3f] %vm394_vm0, %v734_v32 }
 0x110   :  { %395 = vst.msk [vmem:[#allocation3] sm:$0x3f] %vm394_vm0, %v734_v32 }
 0x112   :  { %v175_v54 = vpop.permute.xlu0 %174 }
 0x113   :  { %v153_v55 = vpop.permute.xlu1 %152  ;;  %v253_v56 = vld [vmem:[#allocation2 + $0x3] sm:$0xff]  ;;  %v254_v57 = vld [vmem:[#allocation2 + $0xb] sm:$0xff] }
 0x114   :  { %163 = vst.msk [vmem:[#allocation2 + $0x1c] sm:$0xff] %vm160_vm1, %v153_v55  ;;  %680 = vmatmul.msk.f32.vlgmr.msra.gmra.mxu0 %vm261_vm10, %v253_v56  ;;  %681 = vmatmul.msk.f32.vlgmr.msra.gmra.mxu3 %vm261_vm10, %v254_v57  ;;  %vm401_vm1 = vcmask 127040  }
 0x115   :  { %185 = vst.msk [vmem:[#allocation2 + $0x1b] sm:$0xff] %vm182_vm3, %v175_v54 }
 0x116   :  { %208 = vst.msk [vmem:[#allocation2 + $0x1a] sm:$0xff] %vm205_vm5, %v198_v45 }
 0x117   :  { %403 = vst.msk [vmem:[#allocation3 + $0x18] sm:$0x1f] %vm401_vm1, %v734_v32 }
 0x118   :  { %402 = vst.msk [vmem:[#allocation3] sm:$0x1f] %vm401_vm1, %v734_v32 }
 0x119   :  { %430 = vst.msk [vmem:[#allocation3 + $0x18] sm:$0xf] %vm428_vm2, %v734_v32 }
 0x11a   :  { %v200_v58 = vpop.permute.xlu0 %199  ;;  %429 = vst.msk [vmem:[#allocation3] sm:$0xf] %vm428_vm2, %v734_v32 }
 0x11b   :  { %v177_v59 = vpop.permute.xlu1 %176 }
 0x11c   :  { %186 = vst.msk [vmem:[#allocation2 + $0x23] sm:$0xff] %vm182_vm3, %v177_v59  ;;  %vm423_vm3 = vcmask 130112  }
 0x11d   :  { %192 = vst.msk [vmem:[#allocation2 + $0x2a] sm:$0xf] %vm190_vm4, %v734_v32  ;;  %vm446_vm4 = vcmask 195712  }
 0x11e   :  { %209 = vst.msk [vmem:[#allocation2 + $0x22] sm:$0xff] %vm205_vm5, %v200_v58  ;;  %vm468_vm5 = vcmask 261312  }
 0x11f   :  { %215 = vst.msk [vmem:[#allocation2 + $0x29] sm:$0x1f] %vm213_vm7, %v734_v32  ;;  %vm491_vm7 = vcmask 326912  }
 0x120   :  { %232 = vst.msk [vmem:[#allocation2 + $0x21] sm:$0xff] %vm228_vm6, %v223_v48 }
 0x121   :  { %235 = vst.msk [vmem:[#allocation2 + $0x28] sm:$0x3f] %vm233_vm8, %v734_v32  ;;  %vm499_vm8 = vcmask 389440  }
 0x122   :  { %v241_v60 = vpop.permute.xlu0 %240 }
 0x123   :  { %v221_v61 = vpop.permute.xlu1 %220 }
 0x124   :  { %231 = vst.msk [vmem:[#allocation2 + $0x19] sm:$0xff] %vm228_vm6, %v221_v61  ;;  %v714_v61 = vld [vmem:[%s1045_s4] ss:$0 sm:$0xff]  ;;  %s736_s4 = smov 32   ;;  %vm476_vm6 = vcmask 322816  }
 0x125   :  { %251 = vst.msk [vmem:[#allocation2 + $0x18] sm:$0xff] %vm248_vm9, %v241_v60 }
 0x12b   :  { %v243_v62 = vpop.permute.xlu1 %242 }
 0x12c   :  { %252 = vst.msk [vmem:[#allocation2 + $0x20] sm:$0xff] %vm248_vm9, %v243_v62  ;;  %vm514_vm9 = vcmask 392512  }
 0x133   :  { %v255_v63 = vld [vmem:[#allocation2 + $0x1b] sm:$0xff]  ;;  %v256_v0 = vld [vmem:[#allocation2 + $0x23] sm:$0xff] }
 0x134   :  { %682 = vmatmul.msk.f32.gmra.mxu3 %vm261_vm10, %v255_v63 }
 0x13c   :  { %683 = vmatmul.msk.f32.gmra.mxu3 %vm261_vm10, %v256_v0  ;;  %vm519_vm10 = vcmask 456064  }
 0x191   :  { %v295_v4 = vpop.f32.mrf.mxu0 }
 0x192   :  { %v311_v7 = vadd.f32 %v713_v3, %v295_v4 }
 0x194   :  { %v316_v11 = vsel %vm315_vm11, %v311_v7, 0.0 }
 0x197   :  { %v298_v1 = vpop.f32.mrf.mxu3 }
 0x198   :  { %v312_v6 = vadd.f32 %v713_v3, %v298_v1 }
 0x19a   :  { %v317_v10 = vsel %vm315_vm11, %v312_v6, 0.0 }
 0x19b   :  { %v318_v14 = vadd.f32 %v317_v10, %v316_v11 }
 0x1b7   :  { %v301_v5 = vpop.f32.mrf.mxu3 }
 0x1b8   :  { %v313_v8 = vadd.f32 %v713_v3, %v301_v5 }
 0x1ba   :  { %v319_v12 = vsel %vm315_vm11, %v313_v8, 0.0 }
 0x1bb   :  { %v320_v17 = vadd.f32 %v319_v12, %v318_v14 }
 0x1bf   :  { %v304_v15 = vpop.f32.mrf.mxu3 }
 0x1c0   :  { %v314_v16 = vadd.f32 %v713_v3, %v304_v15  ;;  %v715_v3 = vld [vmem:[%s1046_s5] ss:$0 sm:$0xff]  ;;  %s737_s5 = smov 40  }
 0x1c2   :  { %v321_v18 = vsel %vm315_vm11, %v314_v16, 0.0 }
 0x1c3   :  { %v322_v20 = vadd.f32 %v321_v18, %v320_v17 }
 0x1c5   :  { %v323_v21 = vrot.slane %v322_v20, 4 }
 0x1c7   :  { %v324_v23 = vadd.f32 %v323_v21, %v322_v20 }
 0x1c9   :  { %v325_v24 = vrot.slane %v324_v23, 2 }
 0x1cb   :  { %v326_v26 = vadd.f32 %v325_v24, %v324_v23  ;;  %v549_v23 = vld [vmem:[%s1048_s6 + $0x30] sm:$0xff]  ;;  %v548_v24 = vld [vmem:[%s1048_s6 + $0x28] sm:$0xff] }
 0x1cc   :  { %692 = vmatpush.msra.mxu2 %v549_v23  ;;  %572 = vmatpush.msra.mxu1 %v549_v23 }
 0x1cd   :  { %v327_v27 = vrot.slane %v326_v26, 1 }
 0x1ce   :  { %693 = vmatpush.msra.mxu2 %v548_v24  ;;  %573 = vmatpush.msra.mxu1 %v548_v24 }
 0x1cf   :  { %v328_v29 = vadd.f32 %v327_v27, %v326_v26  ;;  %v547_v26 = vld [vmem:[%s1048_s6 + $0x20] sm:$0xff] }
 0x1d0   :  { %694 = vmatpush.msra.mxu2 %v547_v26  ;;  %574 = vmatpush.msra.mxu1 %v547_v26 }
 0x1d1   :  { %v336_v30 = vmul.f32 %v917_v28, %v328_v29 }
 0x1d3   :  { %v337_v31 = vsub.f32 %v311_v7, %v336_v30  ;;  %v338_v33 = vsub.f32 %v312_v6, %v336_v30  ;;  %v339_v34 = vsub.f32 %v313_v8, %v336_v30  ;;  %v340_v35 = vsub.f32 %v314_v16, %v336_v30  ;;  %v546_v30 = vld [vmem:[%s1048_s6 + $0x18] sm:$0xff] }
 0x1d4   :  { %695 = vmatpush.msra.mxu2 %v546_v30  ;;  %575 = vmatpush.msra.mxu1 %v546_v30 }
 0x1d5   :  { %v341_v36 = vmul.f32 %v337_v31, %v337_v31  ;;  %v342_v37 = vmul.f32 %v338_v33, %v338_v33  ;;  %v343_v38 = vmul.f32 %v339_v34, %v339_v34  ;;  %v344_v39 = vmul.f32 %v340_v35, %v340_v35 }
 0x1d7   :  { %v345_v40 = vsel %vm315_vm11, %v341_v36, 0.0  ;;  %v346_v41 = vsel %vm315_vm11, %v342_v37, 0.0  ;;  %v348_v43 = vsel %vm315_vm11, %v343_v38, 0.0  ;;  %v350_v45 = vsel %vm315_vm11, %v344_v39, 0.0 }
 0x1d8   :  { %v347_v42 = vadd.f32 %v346_v41, %v345_v40 }
 0x1da   :  { %v349_v44 = vadd.f32 %v348_v43, %v347_v42 }
 0x1dc   :  { %v351_v46 = vadd.f32 %v350_v45, %v349_v44 }
 0x1de   :  { %v352_v47 = vrot.slane %v351_v46, 4 }
 0x1e0   :  { %v353_v48 = vadd.f32 %v352_v47, %v351_v46 }
 0x1e2   :  { %v354_v49 = vrot.slane %v353_v48, 2 }
 0x1e4   :  { %v355_v50 = vadd.f32 %v354_v49, %v353_v48 }
 0x1e6   :  { %v356_v51 = vrot.slane %v355_v50, 1 }
 0x1e8   :  { %v357_v52 = vadd.f32 %v356_v51, %v355_v50 }
 0x1ea   :  { %v358_v53 = vmul.f32 %v357_v52, %v917_v28 }
 0x1ec   :  { %v359_v54 = vadd.f32 1e-05, %v358_v53 }
 0x1ee   :  { %721 = vrsqrt.f32 %v359_v54  ;;  %vm366_vm14 = vweird.f32 %v359_v54 }
 0x1f4   :  { %v722_v55 = vpop.eup %721 }
 0x1f5   :  { %v361_v56 = vmul.f32 %v722_v55, %v359_v54  ;;  %vm367_vm13 = vweird.f32 %v722_v55 }
 0x1f6   :  { %vm368_vm15 = vmor %vm366_vm14, %vm367_vm13  ;;  %vm550_vm13 = vcmask 457728  }
 0x1f7   :  { %v362_v57 = vmul.f32 %v722_v55, %v361_v56 }
 0x1f9   :  { %v363_v58 = vmul.f32 0.5, %v362_v57 }
 0x1fb   :  { %v364_v59 = vsub.f32 1.5, %v363_v58 }
 0x1fd   :  { %v365_v60 = vmul.f32 %v722_v55, %v364_v59 }
 0x1ff   :  { %v369_v62 = vsel %vm368_vm15, %v722_v55, %v365_v60  ;;  %v716_v55 = vld [vmem:[%s1047_s7] ss:$0 sm:$0xff] }
 0x200   :  { %v370_v63 = vmul.f32 %v369_v62, %v337_v31  ;;  %v371_v0 = vmul.f32 %v369_v62, %v338_v33  ;;  %v372_v1 = vmul.f32 %v369_v62, %v339_v34  ;;  %v373_v2 = vmul.f32 %v369_v62, %v340_v35  ;;  %v545_v31 = vld [vmem:[%s1048_s6 + $0x10] sm:$0xff]  ;;  %v544_v33 = vld [vmem:[%s1048_s6 + $0x8] sm:$0xff]  ;;  %v543_v34 = vld [vmem:[%s1048_s6] sm:$0xff] }
 0x201   :  { %696 = vmatpush.msra.mxu2 %v545_v31  ;;  %576 = vmatpush.msra.mxu1 %v545_v31 }
 0x202   :  { %v378_v4 = vmul.f32 %v714_v61, %v370_v63  ;;  %v379_v5 = vmul.f32 %v714_v61, %v371_v0  ;;  %v380_v6 = vmul.f32 %v714_v61, %v372_v1  ;;  %v381_v7 = vmul.f32 %v714_v61, %v373_v2 }
 0x203   :  { %697 = vmatpush.msra.mxu2 %v544_v33  ;;  %577 = vmatpush.msra.mxu1 %v544_v33 }
 0x204   :  { %v386_v8 = vadd.f32 %v715_v3, %v378_v4  ;;  %v387_v9 = vadd.f32 %v715_v3, %v379_v5  ;;  %v388_v10 = vadd.f32 %v715_v3, %v380_v6  ;;  %v389_v11 = vadd.f32 %v715_v3, %v381_v7 }
 0x205   :  { %698 = vmatpush.msra.mxu2 %v543_v34  ;;  %578 = vmatpush.msra.mxu1 %v543_v34 }
 0x206   :  { %v390_v12 = vmax.f32 %v386_v8, 0.0  ;;  %v391_v13 = vmax.f32 %v387_v9, 0.0  ;;  %v392_v14 = vmax.f32 %v388_v10, 0.0  ;;  %v393_v15 = vmax.f32 %v389_v11, 0.0 }
 0x208   :  { %397 = vst.msk [vmem:[#allocation3 + $0x6] sm:$0xff] %vm315_vm11, %v390_v12  ;;  %417 = vrot.lane.b32.xlu1 %v393_v15, %s728_s27  ;;  %438 = vrot.lane.b32.xlu2 %v392_v14, %s732_s15 }
 0x209   :  { %398 = vst.msk [vmem:[#allocation3 + $0xe] sm:$0xff] %vm315_vm11, %v391_v13  ;;  %415 = vrot.lane.b32.xlu0 %v392_v14, %s728_s27 }
 0x20a   :  { %399 = vst.msk [vmem:[#allocation3 + $0x1e] sm:$0xff] %vm315_vm11, %v392_v14 }
 0x20b   :  { %400 = vst.msk [vmem:[#allocation3 + $0x26] sm:$0xff] %vm315_vm11, %v393_v15 }
 0x210   :  { %413 = vrot.lane.b32.xlu2 %v391_v13, %s728_s27  ;;  %411 = vrot.lane.b32.xlu1 %v390_v12, %s728_s27  ;;  %s738_s27 = smov 48  }
 0x211   :  { %440 = vrot.lane.b32.xlu0 %v393_v15, %s732_s15 }
 0x218   :  { %434 = vrot.lane.b32.xlu2 %v390_v12, %s732_s15  ;;  %462 = vrot.lane.b32.xlu1 %v393_v15, %s733_s1 }
 0x219   :  { %460 = vrot.lane.b32.xlu0 %v392_v14, %s733_s1 }
 0x220   :  { %485 = vrot.lane.b32.xlu2 %v393_v15, %s736_s4  ;;  %483 = vrot.lane.b32.xlu1 %v392_v14, %s736_s4 }
 0x221   :  { %436 = vrot.lane.b32.xlu0 %v391_v13, %s732_s15 }
 0x228   :  { %506 = vrot.lane.b32.xlu2 %v392_v14, %s737_s5  ;;  %458 = vrot.lane.b32.xlu1 %v391_v13, %s733_s1 }
 0x229   :  { %456 = vrot.lane.b32.xlu0 %v390_v12, %s733_s1 }
 0x230   :  { %481 = vrot.lane.b32.xlu2 %v391_v13, %s736_s4  ;;  %479 = vrot.lane.b32.xlu1 %v390_v12, %s736_s4 }
 0x231   :  { %508 = vrot.lane.b32.xlu0 %v393_v15, %s737_s5 }
 0x238   :  { %502 = vrot.lane.b32.xlu2 %v390_v12, %s737_s5  ;;  %528 = vrot.lane.b32.xlu1 %v393_v15, %s738_s27 }
 0x239   :  { %526 = vrot.lane.b32.xlu0 %v392_v14, %s738_s27 }
 0x240   :  { %524 = vrot.lane.b32.xlu2 %v391_v13, %s738_s27  ;;  %522 = vrot.lane.b32.xlu1 %v390_v12, %s738_s27 }
 0x241   :  { %504 = vrot.lane.b32.xlu0 %v391_v13, %s737_s5 }
 0x262   :  { %v439_v16 = vpop.permute.xlu2 %438 }
 0x26a   :  { %v414_v17 = vpop.permute.xlu2 %413 }
 0x26b   :  { %425 = vst.msk [vmem:[#allocation3 + $0xd] sm:$0xff] %vm423_vm3, %v414_v17 }
 0x272   :  { %v435_v20 = vpop.permute.xlu2 %434 }
 0x27a   :  { %v418_v18 = vpop.permute.xlu1 %417  ;;  %v486_v25 = vpop.permute.xlu2 %485 }
 0x27b   :  { %427 = vst.msk [vmem:[#allocation3 + $0x25] sm:$0xff] %vm423_vm3, %v418_v18  ;;  %v416_v19 = vpop.permute.xlu0 %415 }
 0x27c   :  { %426 = vst.msk [vmem:[#allocation3 + $0x1d] sm:$0xff] %vm423_vm3, %v416_v19 }
 0x27d   :  { %449 = vst.msk [vmem:[#allocation3 + $0x1c] sm:$0xff] %vm446_vm4, %v439_v16 }
 0x282   :  { %v412_v21 = vpop.permute.xlu1 %411  ;;  %v507_v35 = vpop.permute.xlu2 %506 }
 0x283   :  { %v441_v22 = vpop.permute.xlu0 %440  ;;  %424 = vst.msk [vmem:[#allocation3 + $0x5] sm:$0xff] %vm423_vm3, %v412_v21 }
 0x284   :  { %450 = vst.msk [vmem:[#allocation3 + $0x24] sm:$0xff] %vm446_vm4, %v441_v22 }
 0x285   :  { %447 = vst.msk [vmem:[#allocation3 + $0x4] sm:$0xff] %vm446_vm4, %v435_v20 }
 0x28a   :  { %v463_v27 = vpop.permute.xlu1 %462  ;;  %v482_v39 = vpop.permute.xlu2 %481 }
 0x28b   :  { %v461_v29 = vpop.permute.xlu0 %460  ;;  %472 = vst.msk [vmem:[#allocation3 + $0x23] sm:$0xff] %vm468_vm5, %v463_v27 }
 0x28c   :  { %471 = vst.msk [vmem:[#allocation3 + $0x1b] sm:$0xff] %vm468_vm5, %v461_v29 }
 0x28d   :  { %478 = vst.msk [vmem:[#allocation3 + $0x2a] sm:$0xf] %vm476_vm6, %v734_v32 }
 0x28e   :  { %495 = vst.msk [vmem:[#allocation3 + $0x22] sm:$0xff] %vm491_vm7, %v486_v25 }
 0x28f   :  { %501 = vst.msk [vmem:[#allocation3 + $0x29] sm:$0x1f] %vm499_vm8, %v734_v32 }
 0x292   :  { %v484_v36 = vpop.permute.xlu1 %483  ;;  %v503_v43 = vpop.permute.xlu2 %502 }
 0x293   :  { %v437_v37 = vpop.permute.xlu0 %436  ;;  %494 = vst.msk [vmem:[#allocation3 + $0x1a] sm:$0xff] %vm491_vm7, %v484_v36 }
 0x294   :  { %448 = vst.msk [vmem:[#allocation3 + $0xc] sm:$0xff] %vm446_vm4, %v437_v37 }
 0x295   :  { %517 = vst.msk [vmem:[#allocation3 + $0x19] sm:$0xff] %vm514_vm9, %v507_v35 }
 0x29a   :  { %v459_v38 = vpop.permute.xlu1 %458  ;;  %v525_v49 = vpop.permute.xlu2 %524 }
 0x29b   :  { %v457_v40 = vpop.permute.xlu0 %456  ;;  %470 = vst.msk [vmem:[#allocation3 + $0xb] sm:$0xff] %vm468_vm5, %v459_v38 }
 0x29c   :  { %469 = vst.msk [vmem:[#allocation3 + $0x3] sm:$0xff] %vm468_vm5, %v457_v40 }
 0x29d   :  { %477 = vst.msk [vmem:[#allocation3 + $0x12] sm:$0xf] %vm476_vm6, %v734_v32 }
 0x29e   :  { %493 = vst.msk [vmem:[#allocation3 + $0xa] sm:$0xff] %vm491_vm7, %v482_v39 }
 0x29f   :  { %500 = vst.msk [vmem:[#allocation3 + $0x11] sm:$0x1f] %vm499_vm8, %v734_v32 }
 0x2a2   :  { %v480_v41 = vpop.permute.xlu1 %479 }
 0x2a3   :  { %v509_v42 = vpop.permute.xlu0 %508  ;;  %492 = vst.msk [vmem:[#allocation3 + $0x2] sm:$0xff] %vm491_vm7, %v480_v41 }
 0x2a4   :  { %518 = vst.msk [vmem:[#allocation3 + $0x21] sm:$0xff] %vm514_vm9, %v509_v42  ;;  %v717_v42 = vld [vmem:[%s1049_s8] ss:$0 sm:$0xff] }
 0x2a5   :  { %521 = vst.msk [vmem:[#allocation3 + $0x28] sm:$0x3f] %vm519_vm10, %v734_v32 }
 0x2a6   :  { %515 = vst.msk [vmem:[#allocation3 + $0x1] sm:$0xff] %vm514_vm9, %v503_v43 }
 0x2aa   :  { %v529_v44 = vpop.permute.xlu1 %528 }
 0x2ab   :  { %v527_v45 = vpop.permute.xlu0 %526  ;;  %538 = vst.msk [vmem:[#allocation3 + $0x20] sm:$0xff] %vm534_vm12, %v529_v44 }
 0x2ac   :  { %537 = vst.msk [vmem:[#allocation3 + $0x18] sm:$0xff] %vm534_vm12, %v527_v45 }
 0x2b2   :  { %v523_v46 = vpop.permute.xlu1 %522  ;;  %v542_v50 = vld [vmem:[#allocation3 + $0x23] sm:$0xff] }
 0x2b3   :  { %v505_v47 = vpop.permute.xlu0 %504  ;;  %535 = vst.msk [vmem:[#allocation3] sm:$0xff] %vm534_vm12, %v523_v46  ;;  %v541_v48 = vld [vmem:[#allocation3 + $0x1b] sm:$0xff] }
 0x2b4   :  { %516 = vst.msk [vmem:[#allocation3 + $0x9] sm:$0xff] %vm514_vm9, %v505_v47  ;;  %686 = vmatmul.msk.f32.vlgmr.msra.gmra.mxu2 %vm550_vm13, %v541_v48  ;;  %v718_v47 = vld [vmem:[%s1050_s9] ss:$0 sm:$0xff] }
 0x2b5   :  { %520 = vst.msk [vmem:[#allocation3 + $0x10] sm:$0x3f] %vm519_vm10, %v734_v32 }
 0x2b6   :  { %536 = vst.msk [vmem:[#allocation3 + $0x8] sm:$0xff] %vm534_vm12, %v525_v49 }
 0x2bc   :  { %687 = vmatmul.msk.f32.gmra.mxu2 %vm550_vm13, %v542_v50 }
 0x2bd   :  { %v539_v51 = vld [vmem:[#allocation3 + $0x3] sm:$0xff]  ;;  %v540_v52 = vld [vmem:[#allocation3 + $0xb] sm:$0xff] }
 0x2be   :  { %684 = vmatmul.msk.f32.vlgmr.msra.gmra.mxu1 %vm550_vm13, %v539_v51 }
 0x2c6   :  { %685 = vmatmul.msk.f32.gmra.mxu1 %vm550_vm13, %v540_v52 }
 0x337   :  { %v586_v53 = vpop.f32.mrf.mxu2 }
 0x338   :  { %v598_v32 = vadd.f32 %v716_v55, %v586_v53 }
 0x33a   :  { %v603_v0 = vsel %vm315_vm11, %v598_v32, 0.0 }
 0x33b   :  { %v580_v54 = vpop.f32.mrf.mxu1 }
 0x33c   :  { %v596_v56 = vadd.f32 %v716_v55, %v580_v54 }
 0x33e   :  { %v600_v60 = vsel %vm315_vm11, %v596_v56, 0.0 }
 0x33f   :  { %v589_v57 = vpop.f32.mrf.mxu2 }
 0x340   :  { %v599_v61 = vadd.f32 %v716_v55, %v589_v57 }
 0x342   :  { %v605_v2 = vsel %vm315_vm11, %v599_v61, 0.0 }
 0x343   :  { %v583_v58 = vpop.f32.mrf.mxu1 }
 0x344   :  { %v597_v59 = vadd.f32 %v716_v55, %v583_v58 }
 0x346   :  { %v601_v62 = vsel %vm315_vm11, %v597_v59, 0.0 }
 0x347   :  { %v602_v63 = vadd.f32 %v601_v62, %v600_v60 }
 0x349   :  { %v604_v1 = vadd.f32 %v603_v0, %v602_v63 }
 0x34b   :  { %v606_v3 = vadd.f32 %v605_v2, %v604_v1 }
 0x34d   :  { %v607_v4 = vrot.slane %v606_v3, 4 }
 0x34f   :  { %v608_v5 = vadd.f32 %v607_v4, %v606_v3 }
 0x351   :  { %v609_v6 = vrot.slane %v608_v5, 2 }
 0x353   :  { %v610_v7 = vadd.f32 %v609_v6, %v608_v5 }
 0x355   :  { %v611_v8 = vrot.slane %v610_v7, 1 }
 0x357   :  { %v612_v9 = vadd.f32 %v611_v8, %v610_v7 }
 0x359   :  { %v613_v10 = vmul.f32 %v612_v9, %v917_v28 }
 0x35b   :  { %v614_v11 = vsub.f32 %v596_v56, %v613_v10  ;;  %v615_v12 = vsub.f32 %v597_v59, %v613_v10  ;;  %v616_v13 = vsub.f32 %v598_v32, %v613_v10  ;;  %v617_v14 = vsub.f32 %v599_v61, %v613_v10 }
 0x35d   :  { %v618_v15 = vmul.f32 %v614_v11, %v614_v11  ;;  %v619_v16 = vmul.f32 %v615_v12, %v615_v12  ;;  %v620_v17 = vmul.f32 %v616_v13, %v616_v13  ;;  %v621_v18 = vmul.f32 %v617_v14, %v617_v14 }
 0x35f   :  { %v622_v19 = vsel %vm315_vm11, %v618_v15, 0.0  ;;  %v623_v20 = vsel %vm315_vm11, %v619_v16, 0.0  ;;  %v625_v22 = vsel %vm315_vm11, %v620_v17, 0.0  ;;  %v627_v24 = vsel %vm315_vm11, %v621_v18, 0.0 }
 0x360   :  { %v624_v21 = vadd.f32 %v623_v20, %v622_v19 }
 0x362   :  { %v626_v23 = vadd.f32 %v625_v22, %v624_v21 }
 0x364   :  { %v628_v25 = vadd.f32 %v627_v24, %v626_v23 }
 0x366   :  { %v629_v26 = vrot.slane %v628_v25, 4 }
 0x368   :  { %v630_v27 = vadd.f32 %v629_v26, %v628_v25 }
 0x36a   :  { %v631_v29 = vrot.slane %v630_v27, 2 }
 0x36c   :  { %v632_v30 = vadd.f32 %v631_v29, %v630_v27 }
 0x36e   :  { %v633_v31 = vrot.slane %v632_v30, 1 }
 0x370   :  { %v634_v33 = vadd.f32 %v633_v31, %v632_v30 }
 0x372   :  { %v635_v34 = vmul.f32 %v634_v33, %v917_v28 }
 0x374   :  { %v636_v35 = vadd.f32 1e-05, %v635_v34 }
 0x376   :  { %723 = vrsqrt.f32 %v636_v35  ;;  %vm643_vm15 = vweird.f32 %v636_v35 }
 0x37c   :  { %v724_v36 = vpop.eup %723 }
 0x37d   :  { %v638_v37 = vmul.f32 %v724_v36, %v636_v35  ;;  %vm644_vm14 = vweird.f32 %v724_v36 }
 0x37e   :  { %vm645_vm0 = vmor %vm643_vm15, %vm644_vm14 }
 0x37f   :  { %v639_v38 = vmul.f32 %v724_v36, %v638_v37 }
 0x381   :  { %v640_v39 = vmul.f32 0.5, %v639_v38 }
 0x383   :  { %v641_v40 = vsub.f32 1.5, %v640_v39 }
 0x385   :  { %v642_v41 = vmul.f32 %v724_v36, %v641_v40 }
 0x387   :  { %v646_v43 = vsel %vm645_vm0, %v724_v36, %v642_v41 }
 0x388   :  { %v647_v44 = vmul.f32 %v646_v43, %v614_v11  ;;  %v648_v45 = vmul.f32 %v646_v43, %v615_v12  ;;  %v649_v46 = vmul.f32 %v646_v43, %v616_v13  ;;  %v650_v28 = vmul.f32 %v646_v43, %v617_v14 }
 0x38a   :  { %v655_v48 = vmul.f32 %v717_v42, %v647_v44  ;;  %v656_v49 = vmul.f32 %v717_v42, %v648_v45  ;;  %v657_v50 = vmul.f32 %v717_v42, %v649_v46  ;;  %v658_v51 = vmul.f32 %v717_v42, %v650_v28 }
 0x38c   :  { %v663_v52 = vadd.f32 %v718_v47, %v655_v48  ;;  %v664_v53 = vadd.f32 %v718_v47, %v656_v49  ;;  %v665_v54 = vadd.f32 %v718_v47, %v657_v50  ;;  %v666_v55 = vadd.f32 %v718_v47, %v658_v51 }
 0x38e   :  { %v667_v56 = vmax.f32 %v663_v52, 0.0  ;;  %v668_v57 = vmax.f32 %v664_v53, 0.0  ;;  %v669_v58 = vmax.f32 %v665_v54, 0.0  ;;  %v670_v32 = vmax.f32 %v666_v55, 0.0 }
 0x390   :  { %671 = vst.msk [vmem:[%s1051_s10] sm:$0xff] %vm315_vm11, %v667_v56 }
 0x391   :  { %672 = vst.msk [vmem:[%s1051_s10 + $0x8] sm:$0xff] %vm315_vm11, %v668_v57 }
 0x392   :  { %673 = vst.msk [vmem:[%s1051_s10 + $0x10] sm:$0xff] %vm315_vm11, %v669_v58 }
 0x393   :  { %674 = vst.msk [vmem:[%s1051_s10 + $0x18] sm:$0xff] %vm315_vm11, %v670_v32 }

</bundles_post_ra>
